<compile_context>
chip_gen: v5e
topology: v5e:2x2
jax: 0.10.0
libtpu: 0.0.40
codegen_flags: <defaults>
</compile_context>

<pallas_src>
import jax
import jax.numpy as jnp
import numpy as np
from jax.experimental import pallas as pl
from jax.experimental.pallas import tpu as pltpu


# ---------------------------------------------------------------------------
# Fused kernel: deconv2x2(s=2) -> concat -> conv3x3+ReLU -> conv3x3+ReLU.
# All spatial-W handling is in half-width form: a tensor z of full width W and
# C channels is carried as zh[y, q, p*C + c] == z[y, 2q + p, c].
# ---------------------------------------------------------------------------
def _unet_up_fused_kernel(x2_ref, x1h_ref, uw_ref, ub_ref, w1_ref, b1_ref,
                          w2_ref, b2_ref, o_ref, cat_scr, mid_scr):
    # x2_ref : (1, Hd*Wd, Cin)        bf16  decoder features, spatially flattened
    # x1h_ref: (1, Hd, 2, Wd, 2*C1)   bf16  cropped skip, width-to-depth form
    # uw_ref : (2, Cin, 2*Co)         bf16  deconv weights, dy-major, dx on N
    # ub_ref : (1, 2*Co)              f32
    # w1_ref : (3, 2*(C1+Co), 4*Co)   bf16  conv1 half-width weights, dq on N
    # b1_ref : (1, 2*Co)              f32
    # w2_ref : (3, 2*Co, 4*Co)        bf16
    # b2_ref : (1, 2*Co)              f32
    # o_ref  : (1, Ho2, Wq2, 2*Co)    f32   conv2 output, half-width form
    # cat_scr: (Hd, 2, Wd, Ct)        f32 VMEM   Ct = 2*(C1 + Co)
    # mid_scr: (Ho1, Wq1p, 2*Co)      f32 VMEM   Wq1p = Wq1 rounded up to 8
    Hd = x1h_ref.shape[1]
    Wd = x1h_ref.shape[3]
    C1x2 = x1h_ref.shape[4]
    Hu = 2 * Hd
    Co2 = ub_ref.shape[1]                    # 2 * out_size
    Co4 = 2 * Co2
    Ct = cat_scr.shape[-1]
    Ho1, Wq1p, _ = mid_scr.shape
    _, Ho2, Wq2, _ = o_ref.shape
    Wq1 = Wd - 1                             # conv1 output half-width

    # ---- skip connection -> first Ct-C1x2... channels of the concat scratch.
    cat_scr[:, :, :, 0:C1x2] = x1h_ref[0].astype(jnp.float32)

    # ---- ConvTranspose2d(kernel=2, stride=2): one dx-stacked MXU matmul per
    #      output-row parity dy; the result is already in half-width layout,
    #      written into the upper channels of the concat scratch.
    x2 = x2_ref[0]                           # (Hd*Wd, Cin) bf16
    ub = ub_ref[...]                         # (1, 2*Co) f32 (bias hoisted/tiled)
    for dy in range(2):
        y = jnp.dot(x2, uw_ref[dy], preferred_element_type=jnp.float32) + ub
        cat_scr[:, dy, :, C1x2:Ct] = y.reshape(Hd, Wd, Co2)

    # ---- conv1 (3x3 VALID) + ReLU in half-width form: 3 matmuls, f32 acc.
    cat = cat_scr[...].reshape(Hu, Wd, Ct)   # leading-dims merge: layout-trivial
    b1 = b1_ref[...]
    acc1 = jnp.zeros((Ho1, Wq1, Co2), jnp.float32)
    for dy in range(3):
        r = cat[dy:dy + Ho1].reshape(Ho1 * Wd, Ct).astype(jnp.bfloat16)
        p = jnp.dot(r, w1_ref[dy], preferred_element_type=jnp.float32)
        p = p.reshape(Ho1, Wd, Co4)
        acc1 = acc1 + p[:, 0:Wq1, 0:Co2] + p[:, 1:Wq1 + 1, Co2:Co4]
    mid_scr[:, 0:Wq1, :] = jnp.maximum(acc1 + b1, 0.0)
    if Wq1p > Wq1:                           # zero only the pad column(s), once
        mid_scr[:, Wq1:, :] = jnp.zeros((Ho1, Wq1p - Wq1, Co2), jnp.float32)

    # ---- conv2 (3x3 VALID) + ReLU, reading the VMEM-resident intermediate.
    b2 = b2_ref[...]
    acc2 = jnp.zeros((Ho2, Wq2, Co2), jnp.float32)
    for dy in range(3):
        r = mid_scr[dy:dy + Ho2].reshape(Ho2 * Wq1p, Co2).astype(jnp.bfloat16)
        p = jnp.dot(r, w2_ref[dy], preferred_element_type=jnp.float32)
        p = p.reshape(Ho2, Wq1p, Co4)
        acc2 = acc2 + p[:, 0:Wq2, 0:Co2] + p[:, 1:Wq2 + 1, Co2:Co4]
    o_ref[0] = jnp.maximum(acc2 + b2, 0.0).astype(o_ref.dtype)


# ---------------------------------------------------------------------------
# Torch-style F.pad(inputs1, 2*[offset//2]*2): pad if offset >= 0, crop if < 0.
# ---------------------------------------------------------------------------
def _pad_or_crop_like_torch(x1, target_h, target_w):
    ph = (target_h - x1.shape[1]) // 2
    pw = (target_w - x1.shape[2]) // 2
    assert 2 * ph == target_h - x1.shape[1] and 2 * pw == target_w - x1.shape[2], (
        "unetUp needs an even spatial offset between the skip and upsampled maps")

    def one(x, axis, p):
        if p >= 0:
            pads = [(0, 0)] * x.ndim
            pads[axis] = (p, p)
            return jnp.pad(x, pads)
        idx = [slice(None)] * x.ndim
        idx[axis] = slice(-p, x.shape[axis] + p)
        return x[tuple(idx)]

    return one(one(x1, 1, ph), 2, pw)


# ---------------------------------------------------------------------------
# Forward wrapper: all layout plumbing here is free row-major reshapes; the
# crop happens before the pallas_call so the kernel never DMAs unused pixels.
# ---------------------------------------------------------------------------
def unet_up_forward(inputs1, inputs2, params):
    """unetUp.forward (is_deconv=True); NHWC inputs, NHWC f32 output."""
    N, Hd, Wd, Cin = inputs2.shape
    Hu, Wu = 2 * Hd, 2 * Wd
    C1 = inputs1.shape[-1]
    Co = params["up_b"].shape[-1]
    assert Wd % 8 == 0, "half-width layout assumes (upsampled width)/2 is 8-aligned"

    x1 = _pad_or_crop_like_torch(inputs1, Hu, Wu)
    assert x1.shape[1] == Hu and x1.shape[2] == Wu

    # Width-to-depth reinterpretation (free) + bf16 at the pallas boundary.
    #   x1h[n, i, py, q, p*C1 + c] == x1[n, 2*i + py, 2*q + p, c]
    x1h = x1.reshape(N, Hd, 2, Wd, 2 * C1).astype(jnp.bfloat16)
    x2f = inputs2.reshape(N, Hd * Wd, Cin).astype(jnp.bfloat16)

    Ho1, Wq1 = Hu - 2, Wd - 1
    Ho2, Wq2 = Ho1 - 2, Wq1 - 1
    Wq1p = ((Wq1 + 7) // 8) * 8
    Ct = 2 * (C1 + Co)

    out = pl.pallas_call(
        _unet_up_fused_kernel,
        out_shape=jax.ShapeDtypeStruct((N, Ho2, Wq2, 2 * Co), jnp.float32),
        grid=(N,),
        in_specs=[
            pl.BlockSpec((1, Hd * Wd, Cin), lambda n: (n, 0, 0)),
            pl.BlockSpec((1, Hd, 2, Wd, 2 * C1), lambda n: (n, 0, 0, 0, 0)),
            pl.BlockSpec((2, Cin, 2 * Co), lambda n: (0, 0, 0)),
            pl.BlockSpec((1, 2 * Co), lambda n: (0, 0)),
            pl.BlockSpec((3, Ct, 4 * Co), lambda n: (0, 0, 0)),
            pl.BlockSpec((1, 2 * Co), lambda n: (0, 0)),
            pl.BlockSpec((3, 2 * Co, 4 * Co), lambda n: (0, 0, 0)),
            pl.BlockSpec((1, 2 * Co), lambda n: (0, 0)),
        ],
        out_specs=pl.BlockSpec((1, Ho2, Wq2, 2 * Co), lambda n: (n, 0, 0, 0)),
        scratch_shapes=[
            pltpu.VMEM((Hd, 2, Wd, Ct), jnp.float32),
            pltpu.VMEM((Ho1, Wq1p, 2 * Co), jnp.float32),
        ],
        compiler_params=pltpu.CompilerParams(
            dimension_semantics=("parallel",)),
    )(x2f, x1h, params["up_w_h"], params["up_b_h"],
      params["w1_h"], params["b1_h"], params["w2_h"], params["b2_h"])

    # (N, Ho2, Wq2, 2*Co) -> (N, Ho2, Wo2, Co): free row-major reinterpretation.
    return out.reshape(N, Ho2, 2 * Wq2, Co)


# ---------------------------------------------------------------------------
# Weight preparation (wrapper-side, one time).
# ---------------------------------------------------------------------------
def _half_width_conv_weight(w):
    """(3, 3, C, Co) HWIO -> (3, 2*C, 4*Co) half-width (width-to-depth) weights.

    Rows:  input half-channel  p*C + c   (p = input column parity).
    Cols:  dq*(2*Co) + s*Co + co         (dq = half-width tap 0/1,
                                          s  = output column parity).
    For each dy:   dq=0 block [[w0, 0 ], [w1, w0]],  dq=1 block [[w2, w1], [0, w2]].
    """
    z = jnp.zeros_like(w[:, 0])
    dq0 = jnp.concatenate([jnp.concatenate([w[:, 0], z],       axis=-1),
                           jnp.concatenate([w[:, 1], w[:, 0]], axis=-1)], axis=-2)
    dq1 = jnp.concatenate([jnp.concatenate([w[:, 2], w[:, 1]], axis=-1),
                           jnp.concatenate([z,       w[:, 2]], axis=-1)], axis=-2)
    return jnp.concatenate([dq0, dq1], axis=-1)


def init_params(key, in_size, out_size, skip_channels):
    """Deterministic synthetic parameters (torch layouts), packed for the kernel."""
    Cin, Co, C1 = in_size, out_size, skip_channels
    f32, bf16 = jnp.float32, jnp.bfloat16
    ks = jax.random.split(key, 6)
    # Round weights to bf16-representable values once so kernel & reference match.
    rw = lambda k, s: (0.1 * jax.random.normal(k, s, f32)).astype(bf16).astype(f32)
    up_w_t = rw(ks[0], (Cin, Co, 2, 2))      # ConvTranspose2d weight (in, out, kH, kW)
    up_b = 0.05 * jax.random.normal(ks[1], (Co,), f32)
    w1_t = rw(ks[2], (Co, Cin, 3, 3))        # Conv2d(in_size, out_size, 3, 1, 0)
    b1 = 0.05 * jax.random.normal(ks[3], (Co,), f32)
    w2_t = rw(ks[4], (Co, Co, 3, 3))         # Conv2d(out_size, out_size, 3, 1, 0)
    b2 = 0.05 * jax.random.normal(ks[5], (Co,), f32)

    up_w = jnp.transpose(up_w_t, (2, 3, 0, 1))      # (2, 2, Cin, Co)  [dy, dx, ci, co]
    w1 = jnp.transpose(w1_t, (2, 3, 1, 0))          # HWIO, input = [skip (C1) | up (Co)]
    w2 = jnp.transpose(w2_t, (2, 3, 1, 0))          # HWIO

    # Kernel-side packed weights.
    up_w_h = jnp.transpose(up_w, (0, 2, 1, 3)).reshape(2, Cin, 2 * Co).astype(bf16)
    w1_h = jnp.concatenate([_half_width_conv_weight(w1[:, :, :C1, :]),
                            _half_width_conv_weight(w1[:, :, C1:, :])],
                           axis=1).astype(bf16)     # rows: [skip p0,p1 | up p0,p1]
    w2_h = _half_width_conv_weight(w2).astype(bf16)
    tile2 = lambda b: jnp.tile(b, 2).reshape(1, 2 * Co).astype(f32)

    return dict(
        # canonical (reference) weights
        up_w=up_w, up_b=up_b, w1=w1, b1=b1, w2=w2, b2=b2,
        # kernel weights
        up_w_h=up_w_h, up_b_h=tile2(up_b),
        w1_h=w1_h, b1_h=tile2(b1),
        w2_h=w2_h, b2_h=tile2(b2))


# ---------------------------------------------------------------------------
# Pure-JAX (XLA) reference, mirroring the kernel's bf16 quantization points.
# ---------------------------------------------------------------------------
def _reference_forward(inputs1, inputs2, params):
    f32 = jnp.float32
    q = lambda t: t.astype(jnp.bfloat16).astype(f32)
    hi = jax.lax.Precision.HIGHEST
    x1, x2 = q(inputs1), q(inputs2)
    N, Hd, Wd, _ = x2.shape
    Co = params["up_b"].shape[-1]
    up = jnp.einsum("nhwc,yxco->nhywxo", x2, params["up_w"], precision=hi)
    up = up.reshape(N, 2 * Hd, 2 * Wd, Co) + params["up_b"]
    x1p = _pad_or_crop_like_torch(x1, up.shape[1], up.shape[2])
    x = q(jnp.concatenate([x1p, up], axis=-1))
    dn = ("NHWC", "HWIO", "NHWC")
    x = jax.lax.conv_general_dilated(x, params["w1"], (1, 1), "VALID",
                                     dimension_numbers=dn, precision=hi) + params["b1"]
    x = q(jnp.maximum(x, 0.0))
    x = jax.lax.conv_general_dilated(x, params["w2"], (1, 1), "VALID",
                                     dimension_numbers=dn, precision=hi) + params["b2"]
    return jnp.maximum(x, 0.0)


if __name__ == "__main__":
    # unetUp(in_size=16, out_size=8, is_deconv=True)
    in_size, out_size = 16, 8
    c_skip = in_size - out_size        # inputs1 channels so the concat has in_size
    N = 2
    Hd = Wd = 8                        # decoder feature map -> upsampled to 16x16
    H1 = W1 = 24                       # skip feature map -> cropped by 4 per side

    key = jax.random.PRNGKey(0)
    k1, k2, kp = jax.random.split(key, 3)
    inputs1 = jax.random.normal(k1, (N, H1, W1, c_skip), jnp.float32)   # NHWC
    inputs2 = jax.random.normal(k2, (N, Hd, Wd, in_size), jnp.float32)  # NHWC
    params = init_params(kp, in_size, out_size, c_skip)

    fwd = jax.jit(unet_up_forward)
    out = jax.block_until_ready(fwd(inputs1, inputs2, params))

    assert out.shape == (N, 2 * Hd - 4, 2 * Wd - 4, out_size), out.shape
    assert bool(jnp.all(out >= 0.0))   # ReLU output

    ref = jax.block_until_ready(_reference_forward(inputs1, inputs2, params))
    np.testing.assert_allclose(np.asarray(out), np.asarray(ref),
                               rtol=5e-2, atol=5e-2)
    print("KERNEL_OK")
</pallas_src>

<mosaic_0001>
module attributes {stable_mosaic.version = 11 : i64} {
  func.func @_unet_up_fused_kernel(%arg0: i32, %arg1: memref<1x64x16xbf16, #tpu.memory_space<vmem>>, %arg2: memref<1x8x2x8x16xbf16, #tpu.memory_space<vmem>>, %arg3: memref<2x16x16xbf16, #tpu.memory_space<vmem>>, %arg4: memref<1x16xf32, #tpu.memory_space<vmem>>, %arg5: memref<3x32x32xbf16, #tpu.memory_space<vmem>>, %arg6: memref<1x16xf32, #tpu.memory_space<vmem>>, %arg7: memref<3x16x32xbf16, #tpu.memory_space<vmem>>, %arg8: memref<1x16xf32, #tpu.memory_space<vmem>>, %arg9: memref<1x12x6x16xf32, #tpu.memory_space<vmem>>, %arg10: memref<8x2x8x32xf32, #tpu.memory_space<vmem>>, %arg11: memref<14x8x16xf32, #tpu.memory_space<vmem>>) attributes {dimension_semantics = [#tpu.dimension_semantics<parallel>], iteration_bounds = array<i64: 2>, scalar_prefetch = 0 : i64, scratch_operands = 2 : i64, tpu.core_type = #tpu.core_type<tc>, window_params = [{transform_indices = @transform_0, window_bounds = array<i64: 1, 64, 16>}, {transform_indices = @transform_1, window_bounds = array<i64: 1, 8, 2, 8, 16>}, {pipeline_mode = #tpu.pipeline_mode<synchronous>, transform_indices = @transform_2, window_bounds = array<i64: 2, 16, 16>}, {pipeline_mode = #tpu.pipeline_mode<synchronous>, transform_indices = @transform_3, window_bounds = array<i64: 1, 16>}, {pipeline_mode = #tpu.pipeline_mode<synchronous>, transform_indices = @transform_4, window_bounds = array<i64: 3, 32, 32>}, {pipeline_mode = #tpu.pipeline_mode<synchronous>, transform_indices = @transform_5, window_bounds = array<i64: 1, 16>}, {pipeline_mode = #tpu.pipeline_mode<synchronous>, transform_indices = @transform_6, window_bounds = array<i64: 3, 16, 32>}, {pipeline_mode = #tpu.pipeline_mode<synchronous>, transform_indices = @transform_7, window_bounds = array<i64: 1, 16>}, {transform_indices = @transform_8, window_bounds = array<i64: 1, 12, 6, 16>}]} {
    %c0 = arith.constant 0 : index
    %c0_0 = arith.constant 0 : index
    %c0_1 = arith.constant 0 : index
    %c0_2 = arith.constant 0 : index
    %c0_3 = arith.constant 0 : index
    %0 = vector.load %arg2[%c0, %c0_0, %c0_1, %c0_2, %c0_3] : memref<1x8x2x8x16xbf16, #tpu.memory_space<vmem>>, vector<1x8x2x8x16xbf16>
    %1 = vector.shape_cast %0 : vector<1x8x2x8x16xbf16> to vector<8x2x8x16xbf16>
    %2 = arith.extf %1 : vector<8x2x8x16xbf16> to vector<8x2x8x16xf32>
    %c0_4 = arith.constant 0 : index
    %c0_5 = arith.constant 0 : index
    %c0_6 = arith.constant 0 : index
    %c0_7 = arith.constant 0 : index
    %3 = vector.load %arg10[%c0_4, %c0_5, %c0_6, %c0_7] : memref<8x2x8x32xf32, #tpu.memory_space<vmem>>, vector<8x2x8x16xf32>
    tpu.vector_store %arg10[%c0_4, %c0_5, %c0_6, %c0_7], %2 {strides = array<i32>} : memref<8x2x8x32xf32, #tpu.memory_space<vmem>>, vector<8x2x8x16xf32>,
    %c0_8 = arith.constant 0 : index
    %c0_9 = arith.constant 0 : index
    %c0_10 = arith.constant 0 : index
    %4 = vector.load %arg1[%c0_8, %c0_9, %c0_10] : memref<1x64x16xbf16, #tpu.memory_space<vmem>>, vector<1x64x16xbf16>
    %5 = vector.shape_cast %4 : vector<1x64x16xbf16> to vector<64x16xbf16>
    %c0_11 = arith.constant 0 : index
    %c0_12 = arith.constant 0 : index
    %6 = vector.load %arg4[%c0_11, %c0_12] : memref<1x16xf32, #tpu.memory_space<vmem>>, vector<1x16xf32>
    %c0_13 = arith.constant 0 : index
    %c0_14 = arith.constant 0 : index
    %c0_15 = arith.constant 0 : index
    %7 = vector.load %arg3[%c0_13, %c0_14, %c0_15] : memref<2x16x16xbf16, #tpu.memory_space<vmem>>, vector<1x16x16xbf16>
    %8 = vector.shape_cast %7 : vector<1x16x16xbf16> to vector<16x16xbf16>
    %cst = arith.constant dense<0.000000e+00> : vector<64x16xf32>
    %9 = tpu.matmul %5, %8, %cst {dimension_numbers = #tpu.dot_dimension_numbers<[1], [0], [0], [1], [0, 0, 1, 1], [], []>} : vector<64x16xbf16>, vector<16x16xbf16>, vector<64x16xf32> -> vector<64x16xf32>
    %10 = vector.broadcast %6 : vector<1x16xf32> to vector<64x16xf32>
    %11 = arith.addf %9, %10 : vector<64x16xf32>
    %12 = vector.shape_cast %11 : vector<64x16xf32> to vector<8x8x16xf32>
    %c0_16 = arith.constant 0 : index
    %c0_17 = arith.constant 0 : index
    %c0_18 = arith.constant 0 : index
    %c16 = arith.constant 16 : index
    %13 = vector.load %arg10[%c0_16, %c0_17, %c0_18, %c16] : memref<8x2x8x32xf32, #tpu.memory_space<vmem>>, vector<8x1x8x16xf32>
    %14 = vector.shape_cast %13 : vector<8x1x8x16xf32> to vector<8x8x16xf32>
    %15 = vector.shape_cast %12 : vector<8x8x16xf32> to vector<8x1x8x16xf32>
    tpu.vector_store %arg10[%c0_16, %c0_17, %c0_18, %c16], %15 {strides = array<i32>} : memref<8x2x8x32xf32, #tpu.memory_space<vmem>>, vector<8x1x8x16xf32>,
    %c1 = arith.constant 1 : index
    %c0_19 = arith.constant 0 : index
    %c0_20 = arith.constant 0 : index
    %16 = vector.load %arg3[%c1, %c0_19, %c0_20] : memref<2x16x16xbf16, #tpu.memory_space<vmem>>, vector<1x16x16xbf16>
    %17 = vector.shape_cast %16 : vector<1x16x16xbf16> to vector<16x16xbf16>
    %cst_21 = arith.constant dense<0.000000e+00> : vector<64x16xf32>
    %18 = tpu.matmul %5, %17, %cst_21 {dimension_numbers = #tpu.dot_dimension_numbers<[1], [0], [0], [1], [0, 0, 1, 1], [], []>} : vector<64x16xbf16>, vector<16x16xbf16>, vector<64x16xf32> -> vector<64x16xf32>
    %19 = vector.broadcast %6 : vector<1x16xf32> to vector<64x16xf32>
    %20 = arith.addf %18, %19 : vector<64x16xf32>
    %21 = vector.shape_cast %20 : vector<64x16xf32> to vector<8x8x16xf32>
    %c0_22 = arith.constant 0 : index
    %c1_23 = arith.constant 1 : index
    %c0_24 = arith.constant 0 : index
    %c16_25 = arith.constant 16 : index
    %22 = vector.load %arg10[%c0_22, %c1_23, %c0_24, %c16_25] : memref<8x2x8x32xf32, #tpu.memory_space<vmem>>, vector<8x1x8x16xf32>
    %23 = vector.shape_cast %22 : vector<8x1x8x16xf32> to vector<8x8x16xf32>
    %24 = vector.shape_cast %21 : vector<8x8x16xf32> to vector<8x1x8x16xf32>
    tpu.vector_store %arg10[%c0_22, %c1_23, %c0_24, %c16_25], %24 {strides = array<i32>} : memref<8x2x8x32xf32, #tpu.memory_space<vmem>>, vector<8x1x8x16xf32>,
    %c0_26 = arith.constant 0 : index
    %c0_27 = arith.constant 0 : index
    %c0_28 = arith.constant 0 : index
    %c0_29 = arith.constant 0 : index
    %25 = vector.load %arg10[%c0_26, %c0_27, %c0_28, %c0_29] : memref<8x2x8x32xf32, #tpu.memory_space<vmem>>, vector<8x2x8x32xf32>
    %26 = vector.shape_cast %25 : vector<8x2x8x32xf32> to vector<16x8x32xf32>
    %c0_30 = arith.constant 0 : index
    %c0_31 = arith.constant 0 : index
    %27 = vector.load %arg6[%c0_30, %c0_31] : memref<1x16xf32, #tpu.memory_space<vmem>>, vector<1x16xf32>
    %cst_32 = arith.constant 0.000000e+00 : f32
    %28 = vector.broadcast %cst_32 : f32 to vector<14x7x16xf32>
    %29 = vector.extract_strided_slice %26 {offsets = [0, 0, 0], sizes = [14, 8, 32], strides = [1, 1, 1]} : vector<16x8x32xf32> to vector<14x8x32xf32>
    %30 = vector.shape_cast %29 : vector<14x8x32xf32> to vector<112x32xf32>
    %31 = arith.truncf %30 : vector<112x32xf32> to vector<112x32xbf16>
    %c0_33 = arith.constant 0 : index
    %c0_34 = arith.constant 0 : index
    %c0_35 = arith.constant 0 : index
    %32 = vector.load %arg5[%c0_33, %c0_34, %c0_35] : memref<3x32x32xbf16, #tpu.memory_space<vmem>>, vector<1x32x32xbf16>
    %33 = vector.shape_cast %32 : vector<1x32x32xbf16> to vector<32x32xbf16>
    %cst_36 = arith.constant dense<0.000000e+00> : vector<112x32xf32>
    %34 = tpu.matmul %31, %33, %cst_36 {dimension_numbers = #tpu.dot_dimension_numbers<[1], [0], [0], [1], [0, 0, 1, 1], [], []>} : vector<112x32xbf16>, vector<32x32xbf16>, vector<112x32xf32> -> vector<112x32xf32>
    %35 = vector.shape_cast %34 : vector<112x32xf32> to vector<14x8x32xf32>
    %36 = vector.extract_strided_slice %35 {offsets = [0, 0, 0], sizes = [14, 7, 16], strides = [1, 1, 1]} : vector<14x8x32xf32> to vector<14x7x16xf32>
    %37 = arith.addf %28, %36 : vector<14x7x16xf32>
    %38 = vector.extract_strided_slice %35 {offsets = [0, 1, 16], sizes = [14, 7, 16], strides = [1, 1, 1]} : vector<14x8x32xf32> to vector<14x7x16xf32>
    %39 = arith.addf %37, %38 : vector<14x7x16xf32>
    %40 = vector.extract_strided_slice %26 {offsets = [1, 0, 0], sizes = [14, 8, 32], strides = [1, 1, 1]} : vector<16x8x32xf32> to vector<14x8x32xf32>
    %41 = vector.shape_cast %40 : vector<14x8x32xf32> to vector<112x32xf32>
    %42 = arith.truncf %41 : vector<112x32xf32> to vector<112x32xbf16>
    %c1_37 = arith.constant 1 : index
    %c0_38 = arith.constant 0 : index
    %c0_39 = arith.constant 0 : index
    %43 = vector.load %arg5[%c1_37, %c0_38, %c0_39] : memref<3x32x32xbf16, #tpu.memory_space<vmem>>, vector<1x32x32xbf16>
    %44 = vector.shape_cast %43 : vector<1x32x32xbf16> to vector<32x32xbf16>
    %cst_40 = arith.constant dense<0.000000e+00> : vector<112x32xf32>
    %45 = tpu.matmul %42, %44, %cst_40 {dimension_numbers = #tpu.dot_dimension_numbers<[1], [0], [0], [1], [0, 0, 1, 1], [], []>} : vector<112x32xbf16>, vector<32x32xbf16>, vector<112x32xf32> -> vector<112x32xf32>
    %46 = vector.shape_cast %45 : vector<112x32xf32> to vector<14x8x32xf32>
    %47 = vector.extract_strided_slice %46 {offsets = [0, 0, 0], sizes = [14, 7, 16], strides = [1, 1, 1]} : vector<14x8x32xf32> to vector<14x7x16xf32>
    %48 = arith.addf %39, %47 : vector<14x7x16xf32>
    %49 = vector.extract_strided_slice %46 {offsets = [0, 1, 16], sizes = [14, 7, 16], strides = [1, 1, 1]} : vector<14x8x32xf32> to vector<14x7x16xf32>
    %50 = arith.addf %48, %49 : vector<14x7x16xf32>
    %51 = vector.extract_strided_slice %26 {offsets = [2, 0, 0], sizes = [14, 8, 32], strides = [1, 1, 1]} : vector<16x8x32xf32> to vector<14x8x32xf32>
    %52 = vector.shape_cast %51 : vector<14x8x32xf32> to vector<112x32xf32>
    %53 = arith.truncf %52 : vector<112x32xf32> to vector<112x32xbf16>
    %c2 = arith.constant 2 : index
    %c0_41 = arith.constant 0 : index
    %c0_42 = arith.constant 0 : index
    %54 = vector.load %arg5[%c2, %c0_41, %c0_42] : memref<3x32x32xbf16, #tpu.memory_space<vmem>>, vector<1x32x32xbf16>
    %55 = vector.shape_cast %54 : vector<1x32x32xbf16> to vector<32x32xbf16>
    %cst_43 = arith.constant dense<0.000000e+00> : vector<112x32xf32>
    %56 = tpu.matmul %53, %55, %cst_43 {dimension_numbers = #tpu.dot_dimension_numbers<[1], [0], [0], [1], [0, 0, 1, 1], [], []>} : vector<112x32xbf16>, vector<32x32xbf16>, vector<112x32xf32> -> vector<112x32xf32>
    %57 = vector.shape_cast %56 : vector<112x32xf32> to vector<14x8x32xf32>
    %58 = vector.extract_strided_slice %57 {offsets = [0, 0, 0], sizes = [14, 7, 16], strides = [1, 1, 1]} : vector<14x8x32xf32> to vector<14x7x16xf32>
    %59 = arith.addf %50, %58 : vector<14x7x16xf32>
    %60 = vector.extract_strided_slice %57 {offsets = [0, 1, 16], sizes = [14, 7, 16], strides = [1, 1, 1]} : vector<14x8x32xf32> to vector<14x7x16xf32>
    %61 = arith.addf %59, %60 : vector<14x7x16xf32>
    %62 = vector.shape_cast %27 : vector<1x16xf32> to vector<1x1x16xf32>
    %63 = vector.broadcast %62 : vector<1x1x16xf32> to vector<14x7x16xf32>
    %64 = arith.addf %61, %63 : vector<14x7x16xf32>
    %cst_44 = arith.constant 0.000000e+00 : f32
    %65 = vector.broadcast %cst_44 : f32 to vector<14x7x16xf32>
    %66 = arith.maximumf %64, %65 : vector<14x7x16xf32>
    %c0_45 = arith.constant 0 : index
    %c0_46 = arith.constant 0 : index
    %c0_47 = arith.constant 0 : index
    %67 = vector.load %arg11[%c0_45, %c0_46, %c0_47] : memref<14x8x16xf32, #tpu.memory_space<vmem>>, vector<14x7x16xf32>
    tpu.vector_store %arg11[%c0_45, %c0_46, %c0_47], %66 {strides = array<i32>} : memref<14x8x16xf32, #tpu.memory_space<vmem>>, vector<14x7x16xf32>,
    %cst_48 = arith.constant 0.000000e+00 : f32
    %68 = vector.broadcast %cst_48 : f32 to vector<14x1x16xf32>
    %c0_49 = arith.constant 0 : index
    %c7 = arith.constant 7 : index
    %c0_50 = arith.constant 0 : index
    %69 = vector.load %arg11[%c0_49, %c7, %c0_50] : memref<14x8x16xf32, #tpu.memory_space<vmem>>, vector<14x1x16xf32>
    tpu.vector_store %arg11[%c0_49, %c7, %c0_50], %68 {strides = array<i32>} : memref<14x8x16xf32, #tpu.memory_space<vmem>>, vector<14x1x16xf32>,
    %c0_51 = arith.constant 0 : index
    %c0_52 = arith.constant 0 : index
    %70 = vector.load %arg8[%c0_51, %c0_52] : memref<1x16xf32, #tpu.memory_space<vmem>>, vector<1x16xf32>
    %cst_53 = arith.constant 0.000000e+00 : f32
    %71 = vector.broadcast %cst_53 : f32 to vector<12x6x16xf32>
    %c0_54 = arith.constant 0 : index
    %c0_55 = arith.constant 0 : index
    %c0_56 = arith.constant 0 : index
    %72 = vector.load %arg11[%c0_54, %c0_55, %c0_56] : memref<14x8x16xf32, #tpu.memory_space<vmem>>, vector<12x8x16xf32>
    %73 = vector.shape_cast %72 : vector<12x8x16xf32> to vector<96x16xf32>
    %74 = arith.truncf %73 : vector<96x16xf32> to vector<96x16xbf16>
    %c0_57 = arith.constant 0 : index
    %c0_58 = arith.constant 0 : index
    %c0_59 = arith.constant 0 : index
    %75 = vector.load %arg7[%c0_57, %c0_58, %c0_59] : memref<3x16x32xbf16, #tpu.memory_space<vmem>>, vector<1x16x32xbf16>
    %76 = vector.shape_cast %75 : vector<1x16x32xbf16> to vector<16x32xbf16>
    %cst_60 = arith.constant dense<0.000000e+00> : vector<96x32xf32>
    %77 = tpu.matmul %74, %76, %cst_60 {dimension_numbers = #tpu.dot_dimension_numbers<[1], [0], [0], [1], [0, 0, 1, 1], [], []>} : vector<96x16xbf16>, vector<16x32xbf16>, vector<96x32xf32> -> vector<96x32xf32>
    %78 = vector.shape_cast %77 : vector<96x32xf32> to vector<12x8x32xf32>
    %79 = vector.extract_strided_slice %78 {offsets = [0, 0, 0], sizes = [12, 6, 16], strides = [1, 1, 1]} : vector<12x8x32xf32> to vector<12x6x16xf32>
    %80 = arith.addf %71, %79 : vector<12x6x16xf32>
    %81 = vector.extract_strided_slice %78 {offsets = [0, 1, 16], sizes = [12, 6, 16], strides = [1, 1, 1]} : vector<12x8x32xf32> to vector<12x6x16xf32>
    %82 = arith.addf %80, %81 : vector<12x6x16xf32>
    %c1_61 = arith.constant 1 : index
    %c0_62 = arith.constant 0 : index
    %c0_63 = arith.constant 0 : index
    %83 = vector.load %arg11[%c1_61, %c0_62, %c0_63] : memref<14x8x16xf32, #tpu.memory_space<vmem>>, vector<12x8x16xf32>
    %84 = vector.shape_cast %83 : vector<12x8x16xf32> to vector<96x16xf32>
    %85 = arith.truncf %84 : vector<96x16xf32> to vector<96x16xbf16>
    %c1_64 = arith.constant 1 : index
    %c0_65 = arith.constant 0 : index
    %c0_66 = arith.constant 0 : index
    %86 = vector.load %arg7[%c1_64, %c0_65, %c0_66] : memref<3x16x32xbf16, #tpu.memory_space<vmem>>, vector<1x16x32xbf16>
    %87 = vector.shape_cast %86 : vector<1x16x32xbf16> to vector<16x32xbf16>
    %cst_67 = arith.constant dense<0.000000e+00> : vector<96x32xf32>
    %88 = tpu.matmul %85, %87, %cst_67 {dimension_numbers = #tpu.dot_dimension_numbers<[1], [0], [0], [1], [0, 0, 1, 1], [], []>} : vector<96x16xbf16>, vector<16x32xbf16>, vector<96x32xf32> -> vector<96x32xf32>
    %89 = vector.shape_cast %88 : vector<96x32xf32> to vector<12x8x32xf32>
    %90 = vector.extract_strided_slice %89 {offsets = [0, 0, 0], sizes = [12, 6, 16], strides = [1, 1, 1]} : vector<12x8x32xf32> to vector<12x6x16xf32>
    %91 = arith.addf %82, %90 : vector<12x6x16xf32>
    %92 = vector.extract_strided_slice %89 {offsets = [0, 1, 16], sizes = [12, 6, 16], strides = [1, 1, 1]} : vector<12x8x32xf32> to vector<12x6x16xf32>
    %93 = arith.addf %91, %92 : vector<12x6x16xf32>
    %c2_68 = arith.constant 2 : index
    %c0_69 = arith.constant 0 : index
    %c0_70 = arith.constant 0 : index
    %94 = vector.load %arg11[%c2_68, %c0_69, %c0_70] : memref<14x8x16xf32, #tpu.memory_space<vmem>>, vector<12x8x16xf32>
    %95 = vector.shape_cast %94 : vector<12x8x16xf32> to vector<96x16xf32>
    %96 = arith.truncf %95 : vector<96x16xf32> to vector<96x16xbf16>
    %c2_71 = arith.constant 2 : index
    %c0_72 = arith.constant 0 : index
    %c0_73 = arith.constant 0 : index
    %97 = vector.load %arg7[%c2_71, %c0_72, %c0_73] : memref<3x16x32xbf16, #tpu.memory_space<vmem>>, vector<1x16x32xbf16>
    %98 = vector.shape_cast %97 : vector<1x16x32xbf16> to vector<16x32xbf16>
    %cst_74 = arith.constant dense<0.000000e+00> : vector<96x32xf32>
    %99 = tpu.matmul %96, %98, %cst_74 {dimension_numbers = #tpu.dot_dimension_numbers<[1], [0], [0], [1], [0, 0, 1, 1], [], []>} : vector<96x16xbf16>, vector<16x32xbf16>, vector<96x32xf32> -> vector<96x32xf32>
    %100 = vector.shape_cast %99 : vector<96x32xf32> to vector<12x8x32xf32>
    %101 = vector.extract_strided_slice %100 {offsets = [0, 0, 0], sizes = [12, 6, 16], strides = [1, 1, 1]} : vector<12x8x32xf32> to vector<12x6x16xf32>
    %102 = arith.addf %93, %101 : vector<12x6x16xf32>
    %103 = vector.extract_strided_slice %100 {offsets = [0, 1, 16], sizes = [12, 6, 16], strides = [1, 1, 1]} : vector<12x8x32xf32> to vector<12x6x16xf32>
    %104 = arith.addf %102, %103 : vector<12x6x16xf32>
    %105 = vector.shape_cast %70 : vector<1x16xf32> to vector<1x1x16xf32>
    %106 = vector.broadcast %105 : vector<1x1x16xf32> to vector<12x6x16xf32>
    %107 = arith.addf %104, %106 : vector<12x6x16xf32>
    %cst_75 = arith.constant 0.000000e+00 : f32
    %108 = vector.broadcast %cst_75 : f32 to vector<12x6x16xf32>
    %109 = arith.maximumf %107, %108 : vector<12x6x16xf32>
    %c0_76 = arith.constant 0 : index
    %c0_77 = arith.constant 0 : index
    %c0_78 = arith.constant 0 : index
    %c0_79 = arith.constant 0 : index
    %110 = vector.load %arg9[%c0_76, %c0_77, %c0_78, %c0_79] : memref<1x12x6x16xf32, #tpu.memory_space<vmem>>, vector<1x12x6x16xf32>
    %111 = vector.shape_cast %110 : vector<1x12x6x16xf32> to vector<12x6x16xf32>
    %112 = vector.shape_cast %109 : vector<12x6x16xf32> to vector<1x12x6x16xf32>
    tpu.vector_store %arg9[%c0_76, %c0_77, %c0_78, %c0_79], %112 {strides = array<i32>} : memref<1x12x6x16xf32, #tpu.memory_space<vmem>>, vector<1x12x6x16xf32>,
    return
  }
  func.func @transform_0(%arg0: i32) -> (i32, i32, i32) {
    %c0_i32 = arith.constant 0 : i32
    %c0_i32_0 = arith.constant 0 : i32
    %c0_i32_1 = arith.constant 0 : i32
    return %arg0, %c0_i32, %c0_i32_0 : i32, i32, i32
  }
  func.func @transform_1(%arg0: i32) -> (i32, i32, i32, i32, i32) {
    %c0_i32 = arith.constant 0 : i32
    %c0_i32_0 = arith.constant 0 : i32
    %c0_i32_1 = arith.constant 0 : i32
    %c0_i32_2 = arith.constant 0 : i32
    %c0_i32_3 = arith.constant 0 : i32
    return %arg0, %c0_i32, %c0_i32_0, %c0_i32_1, %c0_i32_2 : i32, i32, i32, i32, i32
  }
  func.func @transform_2(%arg0: i32) -> (i32, i32, i32) {
    %c0_i32 = arith.constant 0 : i32
    %c0_i32_0 = arith.constant 0 : i32
    %c0_i32_1 = arith.constant 0 : i32
    %c0_i32_2 = arith.constant 0 : i32
    return %c0_i32, %c0_i32_0, %c0_i32_1 : i32, i32, i32
  }
  func.func @transform_3(%arg0: i32) -> (i32, i32) {
    %c0_i32 = arith.constant 0 : i32
    %c0_i32_0 = arith.constant 0 : i32
    %c0_i32_1 = arith.constant 0 : i32
    return %c0_i32, %c0_i32_0 : i32, i32
  }
  func.func @transform_4(%arg0: i32) -> (i32, i32, i32) {
    %c0_i32 = arith.constant 0 : i32
    %c0_i32_0 = arith.constant 0 : i32
    %c0_i32_1 = arith.constant 0 : i32
    %c0_i32_2 = arith.constant 0 : i32
    return %c0_i32, %c0_i32_0, %c0_i32_1 : i32, i32, i32
  }
  func.func @transform_5(%arg0: i32) -> (i32, i32) {
    %c0_i32 = arith.constant 0 : i32
    %c0_i32_0 = arith.constant 0 : i32
    %c0_i32_1 = arith.constant 0 : i32
    return %c0_i32, %c0_i32_0 : i32, i32
  }
  func.func @transform_6(%arg0: i32) -> (i32, i32, i32) {
    %c0_i32 = arith.constant 0 : i32
    %c0_i32_0 = arith.constant 0 : i32
    %c0_i32_1 = arith.constant 0 : i32
    %c0_i32_2 = arith.constant 0 : i32
    return %c0_i32, %c0_i32_0, %c0_i32_1 : i32, i32, i32
  }
  func.func @transform_7(%arg0: i32) -> (i32, i32) {
    %c0_i32 = arith.constant 0 : i32
    %c0_i32_0 = arith.constant 0 : i32
    %c0_i32_1 = arith.constant 0 : i32
    return %c0_i32, %c0_i32_0 : i32, i32
  }
  func.func @transform_8(%arg0: i32) -> (i32, i32, i32, i32) {
    %c0_i32 = arith.constant 0 : i32
    %c0_i32_0 = arith.constant 0 : i32
    %c0_i32_1 = arith.constant 0 : i32
    %c0_i32_2 = arith.constant 0 : i32
    return %arg0, %c0_i32, %c0_i32_0, %c0_i32_1 : i32, i32, i32, i32
  }
}

</mosaic_0001>

<bundles_post_ra>
// kernel: unet_up_forward.1
= control target key start
LH: loop header
LB: loop body
LE: loop exit
PB: predicated region body
PF: predicated region fallthrough
CT: control target
= control target key end

     0   :  { %s2069_s27 = smov 0   ;;  %s2715_s0 = inlined_call_operand.vmem [shape: bf16[2,64,16], index: 0, kind: input, shape index: {}]   ;;  %s2716_s1 = inlined_call_operand.vmem [shape: bf16[2,8,2,8,16], index: 1, kind: input, shape index: {}]   ;;  %s2717_s2 = inlined_call_operand.vmem [shape: bf16[2,16,16], index: 2, kind: input, shape index: {}]   ;;  %s2718_s3 = inlined_call_operand.vmem [shape: f32[1,16], index: 3, kind: input, shape index: {}]   ;;  %s2719_s4 = inlined_call_operand.vmem [shape: bf16[3,32,32], index: 4, kind: input, shape index: {}]   ;;  %s2720_s5 = inlined_call_operand.vmem [shape: f32[1,16], index: 5, kind: input, shape index: {}]   ;;  %s2721_s6 = inlined_call_operand.vmem [shape: bf16[3,16,32], index: 6, kind: input, shape index: {}]   ;;  %s2722_s7 = inlined_call_operand.vmem [shape: f32[1,16], index: 7, kind: input, shape index: {}]   ;;  %s2723_s8 = inlined_call_operand.vmem [shape: f32[2,12,6,16], index: 8, kind: output, shape index: {}]  }
   0x1 LB: > { %s1805_s28 = sadd.s32 4294967295, %s2019_s27   ;;  %p1809_p0 = scmp.ge.s32.totalorder %s2019_s27, 1  ;;  %s2019_s27 = sphi %s2069_s27, %s18_s27  }
   0x2   : > { %p272_p1 = scmp.lt.s32.totalorder %s2019_s27, 3 }
   0x4   : > { %p273_p2 = pnand %p1809_p0, %p272_p1 }
   0x5   : > { %p311_p3 = scmp.lt.s32.totalorder (!%p273_p2), %s1805_s28, 1  ;;  %s2021_s17 = smov (!%p273_p2), 16  }
   0x6   : > { %276 = sbr.rel (%p273_p2) target bundleno = 931 (0x3a3), region = 52 }
   0xb   : > { %v1944_v0 = vld [vmem:[%s2717_s2] sm:$0xff]  ;;  %v1945_v1 = vld [vmem:[%s2717_s2 + $0x8] sm:$0xff]  ;;  %s2725_s28 = smov (!%p311_p3, %s1805_s28), 1  ;;  %vm359_vm0 = vcmask 130048   ;;  %v1949_v23 = vld [vmem:[%s2719_s4 + $0x18] sm:$0xff]  ;;  %vm489_vm1 = vcmask 261248  }
   0xc   : > { %435 = vmatpush.bf16.msra.mxu0 %v1944_v0  ;;  %514 = vmatpush.bf16.msra.mxu1 %v1945_v1  ;;  %s1938_s11 = sshll.u32 %s2725_s28, 5  ;;  %v2010_v8 = vld [vmem:[%s2718_s3] ss:$0 sm:$0xff]  ;;  %s1939_s18 = sshll.u32 %s2725_s28, 6  ;;  %v1947_v24 = vld [vmem:[%s2719_s4 + $0x8] sm:$0xff]  ;;  %v1948_v28 = vld [vmem:[%s2719_s4 + $0x10] sm:$0xff] }
   0xd   : > { %s315_s14 = scalar_lea.vmem %s2715_s0, %s1938_s11  ;;  %s2109_s21 = scalar_lea.vmem %s2716_s1, %s1939_s18  ;;  %v1946_v26 = vld [vmem:[%s2719_s4] sm:$0xff]  ;;  %1994 = vmatpush.bf16.msra.mxu2 %v1947_v24  ;;  %1996 = vmatpush.bf16.msra.mxu3 %v1949_v23  ;;  %v1951_v55 = vld [vmem:[%s2719_s4 + $0x28] sm:$0xff]  ;;  %vm617_vm2 = vcmask 261120   ;;  %vm1177_vm3 = vcmask 122880   ;;  %vm1162_vm4 = vcmask 129024   ;;  %vm1725_vm5 = vcmask 128000  }
   0xe   : > { %v1940_v2 = vld [vmem:[%s315_s14] sm:$0xff]  ;;  %v1941_v3 = vld [vmem:[%s315_s14 + $0x8] sm:$0xff]  ;;  %v1942_v4 = vld [vmem:[%s315_s14 + $0x10] sm:$0xff]  ;;  %s1998_s25 = smul.u32 96, %s2725_s28 }
   0xf   : > { %1835 = vmatmul.msk.bf16.vlgmr.msra.gmra.mxu0 %vm359_vm0, %v1940_v2  ;;  %1845 = vmatmul.msk.bf16.vlgmr.msra.gmra.mxu1 %vm359_vm0, %v1940_v2  ;;  %v1943_v5 = vld [vmem:[%s315_s14 + $0x18] sm:$0xff]  ;;  %v1987_v25 = vld [vmem:[%s2109_s21 + $0x8] sm:$0xff]   ;;  %v1988_v45 = vld [vmem:[%s2109_s21 + $0x10] sm:$0xff]   ;;  %s2022_s14 = smov 112  }
  0x10   : > { %832 = vmatpush.bf16.msrb.mxu0 %v1949_v23  ;;  %645 = vmatpush.bf16.msrb.mxu1 %v1947_v24  ;;  %v1962_v27 = vunpack.c.h.bf16 %v1987_v25  ;;  %v1965_v46 = vunpack.c.l.bf16 %v1988_v45  ;;  %v1961_v47 = vunpack.c.l.bf16 %v1987_v25  ;;  %v1956_v48 = vld [vmem:[%s2109_s21] sm:$0xff]   ;;  %v1966_v51 = vunpack.c.h.bf16 %v1988_v45  ;;  %v1989_v52 = vld [vmem:[%s2109_s21 + $0x18] sm:$0xff]   ;;  %s2642_s30 = scalar_lea.vmem %s2723_s8, %s1998_s25 }
  0x11   : > { %1995 = vmatpush.bf16.msra.mxu2 %v1946_v26  ;;  %1997 = vmatpush.bf16.msra.mxu3 %v1948_v28  ;;  %v1958_v49 = vunpack.c.h.bf16 %v1956_v48  ;;  %v1957_v50 = vunpack.c.l.bf16 %v1956_v48  ;;  %v1969_v53 = vunpack.c.l.bf16 %v1989_v52  ;;  %v1950_v57 = vld [vmem:[%s2719_s4 + $0x20] sm:$0xff]  ;;  %v1970_v59 = vunpack.c.h.bf16 %v1989_v52 }
  0x12   : > { %363 = vst.msk [vmem:[#allocation2 + $0x18] sm:$0xff] %vm359_vm0, %v1962_v27  ;;  %v1990_v58 = vld [vmem:[%s2109_s21 + $0x20] sm:$0xff]  }
  0x13   : > { %364 = vst.msk [vmem:[#allocation2 + $0x20] sm:$0xff] %vm359_vm0, %v1965_v46  ;;  %v1973_v60 = vunpack.c.l.bf16 %v1990_v58  ;;  %v1974_v0 = vunpack.c.h.bf16 %v1990_v58 }
  0x14   : > { %833 = vmatpush.bf16.msrb.mxu0 %v1948_v28  ;;  %646 = vmatpush.bf16.msrb.mxu1 %v1946_v26  ;;  %362 = vst.msk [vmem:[#allocation2 + $0x10] sm:$0xff] %vm359_vm0, %v1961_v47  ;;  %v1993_v26 = vld [vmem:[%s2109_s21 + $0x38] sm:$0xff]  }
  0x15   : > { %361 = vst.msk [vmem:[#allocation2 + $0x8] sm:$0xff] %vm359_vm0, %v1958_v49 }
  0x16   : > { %360 = vst.msk [vmem:[#allocation2] sm:$0xff] %vm359_vm0, %v1957_v50 }
  0x17   : > { %365 = vst.msk [vmem:[#allocation2 + $0x28] sm:$0xff] %vm359_vm0, %v1966_v51 }
  0x18   : > { %366 = vst.msk [vmem:[#allocation2 + $0x30] sm:$0xff] %vm359_vm0, %v1969_v53  ;;  %995 = vmatpush.bf16.msra.mxu0 %v1951_v55 }
  0x19   : > { %367 = vst.msk [vmem:[#allocation2 + $0x38] sm:$0xff] %vm359_vm0, %v1970_v59 }
  0x1a   : > { %368 = vst.msk [vmem:[#allocation2 + $0x40] sm:$0xff] %vm359_vm0, %v1973_v60 }
  0x1b   : > { %369 = vst.msk [vmem:[#allocation2 + $0x48] sm:$0xff] %vm359_vm0, %v1974_v0 }
  0x1c   : > { %996 = vmatpush.bf16.msra.mxu0 %v1950_v57 }
  0x1f   : > { %1836 = vmatmul.msk.bf16.gmra.mxu0 %vm359_vm0, %v1941_v3  ;;  %1846 = vmatmul.msk.bf16.gmra.mxu1 %vm359_vm0, %v1941_v3 }
  0x2f   : > { %1837 = vmatmul.msk.bf16.gmra.mxu0 %vm359_vm0, %v1942_v4  ;;  %1847 = vmatmul.msk.bf16.gmra.mxu1 %vm359_vm0, %v1942_v4 }
  0x3f   : > { %1838 = vmatmul.msk.bf16.gmra.mxu0 %vm359_vm0, %v1943_v5  ;;  %1848 = vmatmul.msk.bf16.gmra.mxu1 %vm359_vm0, %v1943_v5 }
  0x8c   : > { %v437_v6 = vpop.f32.mrf.mxu0  ;;  %v516_v7 = vpop.f32.mrf.mxu1 }
  0x8d   : > { %v438_v15 = vadd.f32 %v2010_v8, %v437_v6  ;;  %v517_v16 = vadd.f32 %v2010_v8, %v516_v7 }
  0x94   : > { %v439_v9 = vpop.f32.mrf.mxu0  ;;  %v518_v10 = vpop.f32.mrf.mxu1 }
  0x95   : > { %v440_v11 = vadd.f32 %v2010_v8, %v439_v9  ;;  %v519_v12 = vadd.f32 %v2010_v8, %v518_v10  ;;  %v1992_v9 = vld [vmem:[%s2109_s21 + $0x30] sm:$0xff]  }
  0x96   : > { %v1982_v27 = vunpack.c.h.bf16 %v1992_v9 }
  0x97   : > { %546 = vrot.lane.b32.xlu1 %v519_v12, %s2021_s17  ;;  %467 = vrot.lane.b32.xlu0 %v440_v11, %s2021_s17  ;;  %v1981_v12 = vunpack.c.l.bf16 %v1992_v9 }
  0x98   : > { %373 = vst.msk [vmem:[#allocation2 + $0x68] sm:$0xff] %vm359_vm0, %v1982_v27 }
  0x99   : > { %372 = vst.msk [vmem:[#allocation2 + $0x60] sm:$0xff] %vm359_vm0, %v1981_v12 }
  0x9c   : > { %v442_v13 = vpop.f32.mrf.mxu0  ;;  %v521_v14 = vpop.f32.mrf.mxu1 }
  0x9d   : > { %v443_v17 = vadd.f32 %v2010_v8, %v442_v13  ;;  %v522_v19 = vadd.f32 %v2010_v8, %v521_v14 }
  0x9f   : > { %544 = vrot.lane.b32.xlu0 %v517_v16, %s2021_s17  ;;  %465 = vrot.lane.b32.xlu1 %v438_v15, %s2021_s17 }
  0xa0   : > { %469 = vrot.lane.b32.xlu2 %v443_v17, %s2021_s17 }
  0xa4   : > { %v444_v18 = vpop.f32.mrf.mxu0  ;;  %v523_v20 = vpop.f32.mrf.mxu1 }
  0xa5   : > { %v445_v21 = vadd.f32 %v2010_v8, %v444_v18  ;;  %v524_v22 = vadd.f32 %v2010_v8, %v523_v20 }
  0xa7   : > { %471 = vrot.lane.b32.xlu0 %v445_v21, %s2021_s17  ;;  %550 = vrot.lane.b32.xlu1 %v524_v22, %s2021_s17 }
  0xa8   : > { %548 = vrot.lane.b32.xlu2 %v522_v19, %s2021_s17 }
  0xac   : > { %v447_v29 = vpop.f32.mrf.mxu0  ;;  %v526_v30 = vpop.f32.mrf.mxu1 }
  0xad   : > { %v448_v31 = vadd.f32 %v2010_v8, %v447_v29  ;;  %v527_v32 = vadd.f32 %v2010_v8, %v526_v30  ;;  %v1985_v30 = vunpack.c.l.bf16 %v1993_v26 }
  0xaf   : > { %552 = vrot.lane.b32.xlu0 %v527_v32, %s2021_s17  ;;  %v1986_v32 = vunpack.c.h.bf16 %v1993_v26  ;;  %374 = vst.msk [vmem:[#allocation2 + $0x70] sm:$0xff] %vm359_vm0, %v1985_v30 }
  0xb0   : > { %473 = vrot.lane.b32.xlu2 %v448_v31, %s2021_s17 }
  0xb1   : > { %375 = vst.msk [vmem:[#allocation2 + $0x78] sm:$0xff] %vm359_vm0, %v1986_v32 }
  0xb4   : > { %v449_v33 = vpop.f32.mrf.mxu0  ;;  %v528_v34 = vpop.f32.mrf.mxu1 }
  0xb5   : > { %v450_v35 = vadd.f32 %v2010_v8, %v449_v33  ;;  %v529_v36 = vadd.f32 %v2010_v8, %v528_v34 }
  0xb7   : > { %475 = vrot.lane.b32.xlu1 %v450_v35, %s2021_s17 }
  0xb8   : > { %554 = vrot.lane.b32.xlu2 %v529_v36, %s2021_s17 }
  0xbc   : > { %v452_v37 = vpop.f32.mrf.mxu0  ;;  %v531_v38 = vpop.f32.mrf.mxu1 }
  0xbd   : > { %v453_v39 = vadd.f32 %v2010_v8, %v452_v37  ;;  %v532_v40 = vadd.f32 %v2010_v8, %v531_v38 }
  0xbf   : > { %477 = vrot.lane.b32.xlu0 %v453_v39, %s2021_s17  ;;  %556 = vrot.lane.b32.xlu1 %v532_v40, %s2021_s17 }
  0xc4   : > { %v533_v41 = vpop.f32.mrf.mxu1  ;;  %v454_v42 = vpop.f32.mrf.mxu0 }
  0xc5   : > { %v534_v43 = vadd.f32 %v2010_v8, %v533_v41  ;;  %v455_v44 = vadd.f32 %v2010_v8, %v454_v42  ;;  %v1991_v8 = vld [vmem:[%s2109_s21 + $0x28] sm:$0xff]  }
  0xc6   : > { %v1978_v10 = vunpack.c.h.bf16 %v1991_v8  ;;  %v1977_v16 = vunpack.c.l.bf16 %v1991_v8 }
  0xc7   : > { %558 = vrot.lane.b32.xlu0 %v534_v43, %s2021_s17  ;;  %479 = vrot.lane.b32.xlu2 %v455_v44, %s2021_s17 }
  0xc8   : > { %371 = vst.msk [vmem:[#allocation2 + $0x58] sm:$0xff] %vm359_vm0, %v1978_v10 }
  0xc9   : > { %370 = vst.msk [vmem:[#allocation2 + $0x50] sm:$0xff] %vm359_vm0, %v1977_v16 }
  0xfa   : > { %v470_v54 = vpop.permute.xlu2 %469 }
  0xfb   : > { %492 = vst.msk [vmem:[#allocation2 + $0x20] sm:$0xff] %vm489_vm1, %v470_v54 }
 0x102   : > { %v549_v56 = vpop.permute.xlu2 %548  ;;  %v581_v1 = vld [vmem:[#allocation2 + $0x20] sm:$0xff] }
 0x103   : > { %571 = vst.msk [vmem:[#allocation2 + $0x28] sm:$0xff] %vm489_vm1, %v549_v56 }
 0x109   : > { %v547_v61 = vpop.permute.xlu1 %546  ;;  %v468_v62 = vpop.permute.xlu0 %467 }
 0x10a   : > { %570 = vst.msk [vmem:[#allocation2 + $0x18] sm:$0xff] %vm489_vm1, %v547_v61  ;;  %v474_v63 = vpop.permute.xlu2 %473  ;;  %v582_v20 = vld [vmem:[#allocation2 + $0x28] sm:$0xff] }
 0x10b   : > { %491 = vst.msk [vmem:[#allocation2 + $0x10] sm:$0xff] %vm489_vm1, %v468_v62  ;;  %v596_v24 = vpack.c.bf16 %v582_v20, %v581_v1 }
 0x10c   : > { %494 = vst.msk [vmem:[#allocation2 + $0x40] sm:$0xff] %vm489_vm1, %v474_v63 }
 0x111   : > { %v545_v2 = vpop.permute.xlu0 %544  ;;  %v466_v3 = vpop.permute.xlu1 %465  ;;  %v580_v4 = vld [vmem:[#allocation2 + $0x18] sm:$0xff] }
 0x112   : > { %569 = vst.msk [vmem:[#allocation2 + $0x8] sm:$0xff] %vm489_vm1, %v545_v2  ;;  %v579_v5 = vld [vmem:[#allocation2 + $0x10] sm:$0xff]  ;;  %v782_v6 = vpack.c.bf16 %v581_v1, %v580_v4  ;;  %v555_v11 = vpop.permute.xlu2 %554 }
 0x113   : > { %490 = vst.msk [vmem:[#allocation2] sm:$0xff] %vm489_vm1, %v466_v3  ;;  %v595_v7 = vpack.c.bf16 %v580_v4, %v579_v5  ;;  %v585_v29 = vld [vmem:[#allocation2 + $0x40] sm:$0xff] }
 0x114   : > { %1877 = vmatmul.msk.bf16.vlgmr.msra.gmra.mxu3 %vm617_vm2, %v782_v6  ;;  %574 = vst.msk [vmem:[#allocation2 + $0x58] sm:$0xff] %vm489_vm1, %v555_v11 }
 0x115   : > { %1858 = vmatmul.msk.bf16.vlgmr.msra.gmra.mxu2 %vm617_vm2, %v595_v7 }
 0x119   : > { %v578_v13 = vld [vmem:[#allocation2 + $0x8] sm:$0xff]  ;;  %v472_v14 = vpop.permute.xlu0 %471  ;;  %v551_v15 = vpop.permute.xlu1 %550 }
 0x11a   : > { %v781_v17 = vpack.c.bf16 %v579_v5, %v578_v13  ;;  %493 = vst.msk [vmem:[#allocation2 + $0x30] sm:$0xff] %vm489_vm1, %v472_v14  ;;  %v577_v18 = vld [vmem:[#allocation2] sm:$0xff] }
 0x11b   : > { %v594_v19 = vpack.c.bf16 %v578_v13, %v577_v18  ;;  %572 = vst.msk [vmem:[#allocation2 + $0x38] sm:$0xff] %vm489_vm1, %v551_v15  ;;  %v588_v42 = vld [vmem:[#allocation2 + $0x58] sm:$0xff] }
 0x11c   : > { %1876 = vmatmul.msk.bf16.vlgmr.msrb.gmra.mxu0 %vm617_vm2, %v781_v17 }
 0x11d   : > { %1857 = vmatmul.msk.bf16.vlgmr.msrb.gmra.mxu1 %vm617_vm2, %v594_v19  ;;  %v1953_v19 = vld [vmem:[%s2721_s6 + $0x8] sm:$0xff] }
 0x11e   : > { %1413 = vmatpush.bf16.msrb.mxu2 %v1953_v19 }
 0x121   : > { %v583_v21 = vld [vmem:[#allocation2 + $0x30] sm:$0xff]  ;;  %v553_v22 = vpop.permute.xlu0 %552  ;;  %v480_v31 = vpop.permute.xlu2 %479 }
 0x122   : > { %v783_v23 = vpack.c.bf16 %v583_v21, %v582_v20  ;;  %573 = vst.msk [vmem:[#allocation2 + $0x48] sm:$0xff] %vm489_vm1, %v553_v22  ;;  %v584_v28 = vld [vmem:[#allocation2 + $0x38] sm:$0xff] }
 0x123   : > { %v784_v33 = vpack.c.bf16 %v585_v29, %v584_v28  ;;  %497 = vst.msk [vmem:[#allocation2 + $0x70] sm:$0xff] %vm489_vm1, %v480_v31  ;;  %v597_v34 = vpack.c.bf16 %v584_v28, %v583_v21 }
 0x124   : > { %1878 = vmatmul.msk.bf16.gmra.mxu3 %vm617_vm2, %v783_v23 }
 0x125   : > { %1859 = vmatmul.msk.bf16.gmra.mxu2 %vm617_vm2, %v596_v24 }
 0x129   : > { %v476_v25 = vpop.permute.xlu1 %475  ;;  %v586_v39 = vld [vmem:[#allocation2 + $0x48] sm:$0xff] }
 0x12a   : > { %495 = vst.msk [vmem:[#allocation2 + $0x50] sm:$0xff] %vm489_vm1, %v476_v25  ;;  %v598_v41 = vpack.c.bf16 %v586_v39, %v585_v29  ;;  %v591_v47 = vld [vmem:[#allocation2 + $0x70] sm:$0xff] }
 0x12b   : > { %v1954_v25 = vld [vmem:[%s2721_s6 + $0x10] sm:$0xff] }
 0x12c   : > { %1895 = vmatmul.msk.bf16.vlgmr.msra.gmra.mxu0 %vm617_vm2, %v595_v7  ;;  %1582 = vmatpush.bf16.msrb.mxu3 %v1954_v25 }
 0x131   : > { %v478_v35 = vpop.permute.xlu0 %477  ;;  %v557_v36 = vpop.permute.xlu1 %556  ;;  %v587_v38 = vld [vmem:[#allocation2 + $0x50] sm:$0xff] }
 0x132   : > { %496 = vst.msk [vmem:[#allocation2 + $0x60] sm:$0xff] %vm489_vm1, %v478_v35  ;;  %v785_v40 = vpack.c.bf16 %v587_v38, %v586_v39  ;;  %v599_v45 = vpack.c.bf16 %v588_v42, %v587_v38 }
 0x133   : > { %575 = vst.msk [vmem:[#allocation2 + $0x68] sm:$0xff] %vm489_vm1, %v557_v36 }
 0x134   : > { %1879 = vmatmul.msk.bf16.gmra.mxu3 %vm617_vm2, %v784_v33 }
 0x135   : > { %1860 = vmatmul.msk.bf16.gmra.mxu2 %vm617_vm2, %v597_v34 }
 0x139   : > { %v559_v37 = vpop.permute.xlu0 %558  ;;  %v589_v43 = vld [vmem:[#allocation2 + $0x60] sm:$0xff] }
 0x13a   : > { %576 = vst.msk [vmem:[#allocation2 + $0x78] sm:$0xff] %vm489_vm1, %v559_v37  ;;  %v786_v44 = vpack.c.bf16 %v589_v43, %v588_v42  ;;  %v590_v46 = vld [vmem:[#allocation2 + $0x68] sm:$0xff] }
 0x13b   : > { %v600_v48 = vpack.c.bf16 %v590_v46, %v589_v43  ;;  %v787_v49 = vpack.c.bf16 %v591_v47, %v590_v46 }
 0x13c   : > { %1896 = vmatmul.msk.bf16.gmra.mxu0 %vm617_vm2, %v596_v24 }
 0x141   : > { %v592_v50 = vld [vmem:[#allocation2 + $0x78] sm:$0xff] }
 0x142   : > { %v968_v51 = vpack.c.bf16 %v592_v50, %v591_v47 }
 0x144   : > { %1880 = vmatmul.msk.bf16.gmra.mxu3 %vm617_vm2, %v785_v40 }
 0x145   : > { %1861 = vmatmul.msk.bf16.gmra.mxu2 %vm617_vm2, %v598_v41 }
 0x14c   : > { %1897 = vmatmul.msk.bf16.gmra.mxu0 %vm617_vm2, %v597_v34 }
 0x154   : > { %1881 = vmatmul.msk.bf16.gmra.mxu3 %vm617_vm2, %v786_v44 }
 0x155   : > { %1862 = vmatmul.msk.bf16.gmra.mxu2 %vm617_vm2, %v599_v45 }
 0x15c   : > { %1898 = vmatmul.msk.bf16.gmra.mxu0 %vm617_vm2, %v598_v41 }
 0x164   : > { %1882 = vmatmul.msk.bf16.gmra.mxu3 %vm617_vm2, %v787_v49 }
 0x165   : > { %1863 = vmatmul.msk.bf16.gmra.mxu2 %vm617_vm2, %v600_v48 }
 0x16c   : > { %1899 = vmatmul.msk.bf16.gmra.mxu0 %vm617_vm2, %v599_v45 }
 0x17c   : > { %1900 = vmatmul.msk.bf16.gmra.mxu0 %vm617_vm2, %v600_v48 }
 0x18c   : > { %1901 = vmatmul.msk.bf16.gmra.mxu0 %vm617_vm2, %v968_v51 }
 0x197   : > { %v2206_v55 = vpop.f32.mrf.mxu3 }
 0x198   : > { %v2201_v52 = vpop.f32.mrf.mxu2  ;;  %v900_v62 = vrot.slane %v2206_v55, 1 }
 0x199   : > { %v713_v53 = vrot.slane %v2201_v52, 1  ;;  %v2204_v54 = vpop.f32.mrf.mxu0 }
 0x19a   : > { %v2208_v56 = vpop.f32.mrf.mxu1  ;;  %v898_v4 = vrot.slane %v2204_v54, 1 }
 0x19b   : > { %v711_v57 = vrot.slane %v2208_v56, 1  ;;  %729 = vrot.lane.b32.xlu2 %v713_v53, %s2022_s14 }
 0x19d   : > { %725 = vrot.lane.b32.xlu0 %v711_v57, %s2022_s14 }
 0x19f   : > { %v2222_v0 = vpop.f32.mrf.mxu3 }
 0x1a0   : > { %v2213_v58 = vpop.f32.mrf.mxu2  ;;  %v901_v8 = vrot.slane %v2222_v0, 1 }
 0x1a1   : > { %v2215_v59 = vpop.f32.mrf.mxu0  ;;  %v714_v10 = vrot.slane %v2213_v58, 1 }
 0x1a2   : > { %v2217_v60 = vpop.f32.mrf.mxu1  ;;  %v899_v61 = vrot.slane %v2215_v59, 1 }
 0x1a3   : > { %v712_v63 = vrot.slane %v2217_v60, 1 }
 0x1a4   : > { %914 = vrot.lane.b32.xlu2 %v899_v61, %s2022_s14 }
 0x1a5   : > { %916 = vrot.lane.b32.xlu0 %v900_v62, %s2022_s14  ;;  %727 = vrot.lane.b32.xlu1 %v712_v63, %s2022_s14 }
 0x1a7   : > { %v2235_v5 = vpop.f32.mrf.mxu3 }
 0x1a8   : > { %v2227_v1 = vpop.f32.mrf.mxu2  ;;  %v902_v23 = vrot.slane %v2235_v5, 1 }
 0x1a9   : > { %v2229_v2 = vpop.f32.mrf.mxu0  ;;  %v715_v20 = vrot.slane %v2227_v1, 1 }
 0x1aa   : > { %v1061_v3 = vrot.slane %v2229_v2, 1 }
 0x1ac   : > { %1075 = vrot.lane.b32.xlu2 %v1061_v3, %s2022_s14 }
 0x1ad   : > { %912 = vrot.lane.b32.xlu1 %v898_v4, %s2022_s14 }
 0x1af   : > { %v2247_v11 = vpop.f32.mrf.mxu3 }
 0x1b0   : > { %v2237_v6 = vpop.f32.mrf.mxu2  ;;  %v903_v26 = vrot.slane %v2247_v11, 1 }
 0x1b1   : > { %v2239_v7 = vpop.f32.mrf.mxu0  ;;  %v716_v13 = vrot.slane %v2237_v6, 1 }
 0x1b2   : > { %v1062_v9 = vrot.slane %v2239_v7, 1 }
 0x1b4   : > { %918 = vrot.lane.b32.xlu2 %v901_v8, %s2022_s14  ;;  %1077 = vrot.lane.b32.xlu0 %v1062_v9, %s2022_s14 }
 0x1b5   : > { %731 = vrot.lane.b32.xlu1 %v714_v10, %s2022_s14 }
 0x1b7   : > { %v2259_v17 = vpop.f32.mrf.mxu3 }
 0x1b8   : > { %v2253_v15 = vpop.f32.mrf.mxu2  ;;  %v904_v36 = vrot.slane %v2259_v17, 1 }
 0x1b9   : > { %v2249_v12 = vpop.f32.mrf.mxu0  ;;  %v717_v32 = vrot.slane %v2253_v15, 1 }
 0x1ba   : > { %v1063_v14 = vrot.slane %v2249_v12, 1 }
 0x1bc   : > { %735 = vrot.lane.b32.xlu2 %v716_v13, %s2022_s14 }
 0x1bd   : > { %1079 = vrot.lane.b32.xlu1 %v1063_v14, %s2022_s14 }
 0x1bf   : > { %v2278_v27 = vpop.f32.mrf.mxu3 }
 0x1c0   : > { %v2267_v21 = vpop.f32.mrf.mxu2  ;;  %v905_v38 = vrot.slane %v2278_v27, 1 }
 0x1c1   : > { %v2257_v16 = vpop.f32.mrf.mxu0  ;;  %v718_v30 = vrot.slane %v2267_v21, 1 }
 0x1c2   : > { %v1064_v18 = vrot.slane %v2257_v16, 1 }
 0x1c4   : > { %1081 = vrot.lane.b32.xlu0 %v1064_v18, %s2022_s14 }
 0x1c5   : > { %733 = vrot.lane.b32.xlu1 %v715_v20, %s2022_s14 }
 0x1c7   : > { %v2293_v33 = vpop.f32.mrf.mxu3 }
 0x1c8   : > { %v2283_v28 = vpop.f32.mrf.mxu2  ;;  %v906_v46 = vrot.slane %v2293_v33, 1 }
 0x1c9   : > { %v2270_v22 = vpop.f32.mrf.mxu0  ;;  %v719_v43 = vrot.slane %v2283_v28, 1 }
 0x1ca   : > { %v1065_v24 = vrot.slane %v2270_v22, 1 }
 0x1cc   : > { %920 = vrot.lane.b32.xlu0 %v902_v23, %s2022_s14  ;;  %1083 = vrot.lane.b32.xlu2 %v1065_v24, %s2022_s14 }
 0x1cd   : > { %922 = vrot.lane.b32.xlu1 %v903_v26, %s2022_s14 }
 0x1cf   : > { %v2305_v39 = vpop.f32.mrf.mxu3 }
 0x1d0   : > { %v2295_v34 = vpop.f32.mrf.mxu2  ;;  %v907_v49 = vrot.slane %v2305_v39, 1 }
 0x1d1   : > { %v2285_v29 = vpop.f32.mrf.mxu0  ;;  %v720_v41 = vrot.slane %v2295_v34, 1 }
 0x1d2   : > { %v1066_v31 = vrot.slane %v2285_v29, 1 }
 0x1d4   : > { %1085 = vrot.lane.b32.xlu0 %v1066_v31, %s2022_s14  ;;  %739 = vrot.lane.b32.xlu2 %v718_v30, %s2022_s14  ;;  %v2023_v31 = vmov 0.0  }
 0x1d5   : > { %737 = vrot.lane.b32.xlu1 %v717_v32, %s2022_s14  ;;  %1178 = vst.msk [vmem:[#allocation3 + $0x7] sm:$0x1] %vm1177_vm3, %v2023_v31 }
 0x1d6   : > { %1179 = vst.msk [vmem:[#allocation3 + $0xf] sm:$0x1] %vm1177_vm3, %v2023_v31 }
 0x1d7   : > { %v2320_v47 = vpop.f32.mrf.mxu3  ;;  %1180 = vst.msk [vmem:[#allocation3 + $0x17] sm:$0x1] %vm1177_vm3, %v2023_v31 }
 0x1d8   : > { %v2312_v44 = vpop.f32.mrf.mxu2  ;;  %v908_v4 = vrot.slane %v2320_v47, 1  ;;  %1181 = vst.msk [vmem:[#allocation3 + $0x1f] sm:$0x1] %vm1177_vm3, %v2023_v31 }
 0x1d9   : > { %v2297_v35 = vpop.f32.mrf.mxu0  ;;  %v721_v61 = vrot.slane %v2312_v44, 1  ;;  %1182 = vst.msk [vmem:[#allocation3 + $0x27] sm:$0x1] %vm1177_vm3, %v2023_v31 }
 0x1da   : > { %v1067_v37 = vrot.slane %v2297_v35, 1  ;;  %1183 = vst.msk [vmem:[#allocation3 + $0x2f] sm:$0x1] %vm1177_vm3, %v2023_v31 }
 0x1db   : > { %1184 = vst.msk [vmem:[#allocation3 + $0x37] sm:$0x1] %vm1177_vm3, %v2023_v31 }
 0x1dc   : > { %924 = vrot.lane.b32.xlu0 %v904_v36, %s2022_s14  ;;  %1087 = vrot.lane.b32.xlu2 %v1067_v37, %s2022_s14  ;;  %1185 = vst.msk [vmem:[#allocation3 + $0x3f] sm:$0x1] %vm1177_vm3, %v2023_v31 }
 0x1dd   : > { %926 = vrot.lane.b32.xlu1 %v905_v38, %s2022_s14  ;;  %1186 = vst.msk [vmem:[#allocation3 + $0x47] sm:$0x1] %vm1177_vm3, %v2023_v31 }
 0x1de   : > { %1187 = vst.msk [vmem:[#allocation3 + $0x4f] sm:$0x1] %vm1177_vm3, %v2023_v31 }
 0x1df   : > { %v2334_v62 = vpop.f32.mrf.mxu3  ;;  %1188 = vst.msk [vmem:[#allocation3 + $0x57] sm:$0x1] %vm1177_vm3, %v2023_v31 }
 0x1e0   : > { %v2326_v50 = vpop.f32.mrf.mxu2  ;;  %v909_v9 = vrot.slane %v2334_v62, 1  ;;  %1189 = vst.msk [vmem:[#allocation3 + $0x5f] sm:$0x1] %vm1177_vm3, %v2023_v31 }
 0x1e1   : > { %v2307_v40 = vpop.f32.mrf.mxu0  ;;  %v722_v53 = vrot.slane %v2326_v50, 1  ;;  %1190 = vst.msk [vmem:[#allocation3 + $0x67] sm:$0x1] %vm1177_vm3, %v2023_v31 }
 0x1e2   : > { %v1068_v42 = vrot.slane %v2307_v40, 1  ;;  %1191 = vst.msk [vmem:[#allocation3 + $0x6f] sm:$0x1] %vm1177_vm3, %v2023_v31 }
 0x1e4   : > { %1089 = vrot.lane.b32.xlu0 %v1068_v42, %s2022_s14  ;;  %743 = vrot.lane.b32.xlu2 %v720_v41, %s2022_s14  ;;  %v1952_v41 = vld [vmem:[%s2721_s6] sm:$0xff] }
 0x1e5   : > { %741 = vrot.lane.b32.xlu1 %v719_v43, %s2022_s14  ;;  %1244 = vmatpush.bf16.msra.mxu1 %v1952_v41 }
 0x1e7   : > { %v2349_v10 = vpop.f32.mrf.mxu3 }
 0x1e8   : > { %v2338_v63 = vpop.f32.mrf.mxu2  ;;  %v910_v26 = vrot.slane %v2349_v10, 1 }
 0x1e9   : > { %v2317_v45 = vpop.f32.mrf.mxu0  ;;  %v723_v20 = vrot.slane %v2338_v63, 1 }
 0x1ea   : > { %v1069_v48 = vrot.slane %v2317_v45, 1 }
 0x1ec   : > { %928 = vrot.lane.b32.xlu0 %v906_v46, %s2022_s14  ;;  %1091 = vrot.lane.b32.xlu2 %v1069_v48, %s2022_s14 }
 0x1ed   : > { %930 = vrot.lane.b32.xlu1 %v907_v49, %s2022_s14 }
 0x1ef   : > { %v2361_v24 = vpop.f32.mrf.mxu3 }
 0x1f0   : > { %v2351_v13 = vpop.f32.mrf.mxu2  ;;  %v911_v32 = vrot.slane %v2361_v24, 1 }
 0x1f1   : > { %v2329_v51 = vpop.f32.mrf.mxu0  ;;  %v724_v18 = vrot.slane %v2351_v13, 1 }
 0x1f2   : > { %v1070_v57 = vrot.slane %v2329_v51, 1 }
 0x1f4   : > { %1093 = vrot.lane.b32.xlu0 %v1070_v57, %s2022_s14  ;;  %747 = vrot.lane.b32.xlu2 %v722_v53, %s2022_s14 }
 0x1f5   : > { %745 = vrot.lane.b32.xlu1 %v721_v61, %s2022_s14  ;;  %v730_v23 = vpop.permute.xlu2 %729 }
 0x1f9   : > { %v2341_v3 = vpop.f32.mrf.mxu0 }
 0x1fa   : > { %v1071_v8 = vrot.slane %v2341_v3, 1 }
 0x1fc   : > { %932 = vrot.lane.b32.xlu0 %v908_v4, %s2022_s14  ;;  %1095 = vrot.lane.b32.xlu2 %v1071_v8, %s2022_s14 }
 0x1fd   : > { %934 = vrot.lane.b32.xlu1 %v909_v9, %s2022_s14 }
 0x1fe   : > { %v915_v36 = vpop.permute.xlu2 %914 }
 0x201   : > { %v2353_v14 = vpop.f32.mrf.mxu0 }
 0x202   : > { %v1072_v19 = vrot.slane %v2353_v14, 1 }
 0x204   : > { %1097 = vrot.lane.b32.xlu0 %v1072_v19, %s2022_s14  ;;  %751 = vrot.lane.b32.xlu2 %v724_v18, %s2022_s14  ;;  %v2399_v19 = vld [vmem:[%s2720_s5] ss:$0 sm:$0xff] }
 0x205   : > { %749 = vrot.lane.b32.xlu1 %v723_v20, %s2022_s14 }
 0x206   : > { %v1076_v43 = vpop.permute.xlu2 %1075 }
 0x209   : > { %v2363_v25 = vpop.f32.mrf.mxu0 }
 0x20a   : > { %v1073_v30 = vrot.slane %v2363_v25, 1 }
 0x20c   : > { %936 = vrot.lane.b32.xlu0 %v910_v26, %s2022_s14  ;;  %1099 = vrot.lane.b32.xlu2 %v1073_v30, %s2022_s14 }
 0x20d   : > { %938 = vrot.lane.b32.xlu1 %v911_v32, %s2022_s14 }
 0x20e   : > { %v919_v8 = vpop.permute.xlu2 %918 }
 0x20f   : > { %v726_v42 = vpop.permute.xlu0 %725 }
 0x210   : > { %v767_v49 = vadd.f32 %v726_v42, %v2208_v56 }
 0x211   : > { %v2378_v37 = vpop.f32.mrf.mxu0 }
 0x212   : > { %v1074_v38 = vrot.slane %v2378_v37, 1  ;;  %v870_v61 = vadd.f32 %v2204_v54, %v767_v49 }
 0x214   : > { %1101 = vrot.lane.b32.xlu0 %v1074_v38, %s2022_s14 }
 0x216   : > { %v736_v42 = vpop.permute.xlu2 %735 }
 0x217   : > { %v728_v46 = vpop.permute.xlu1 %727  ;;  %v917_v57 = vpop.permute.xlu0 %916 }
 0x218   : > { %v768_v48 = vadd.f32 %v728_v46, %v2217_v60  ;;  %v769_v60 = vadd.f32 %v730_v23, %v2201_v52 }
 0x21a   : > { %v871_v53 = vadd.f32 %v2215_v59, %v768_v48  ;;  %v872_v32 = vadd.f32 %v2206_v55, %v769_v60 }
 0x21c   : > { %v955_v18 = vadd.f32 %v915_v36, %v871_v53 }
 0x21e   : > { %v1034_v56 = vadd.f32 %v2239_v7, %v955_v18 }
 0x21f   : > { %v913_v4 = vpop.permute.xlu1 %912 }
 0x220   : > { %v954_v9 = vadd.f32 %v913_v4, %v870_v61 }
 0x222   : > { %v1033_v20 = vadd.f32 %v2229_v2, %v954_v9  ;;  %v956_v2 = vadd.f32 %v917_v57, %v872_v32 }
 0x224   : > { %v1117_v26 = vadd.f32 %v1076_v43, %v1033_v20  ;;  %v1035_v23 = vadd.f32 %v2249_v12, %v956_v2 }
 0x226   : > { %v1134_v59 = vadd.f32 %v2399_v19, %v1117_v26  ;;  %v1078_v30 = vpop.permute.xlu0 %1077  ;;  %v1084_v55 = vpop.permute.xlu2 %1083 }
 0x227   : > { %v1118_v54 = vadd.f32 %v1078_v30, %v1034_v56  ;;  %v732_v31 = vpop.permute.xlu1 %731 }
 0x228   : > { %v1148_v36 = vmax.f32 %v1134_v59, 0.0  ;;  %v770_v41 = vadd.f32 %v732_v31, %v2213_v58 }
 0x229   : > { %v1135_v38 = vadd.f32 %v2399_v19, %v1118_v54 }
 0x22a   : > { %1163 = vst.msk [vmem:[#allocation3] sm:$0x7f] %vm1162_vm4, %v1148_v36  ;;  %v873_v7 = vadd.f32 %v2222_v0, %v770_v41 }
 0x22b   : > { %v1149_v52 = vmax.f32 %v1135_v38, 0.0 }
 0x22c   : > { %v957_v48 = vadd.f32 %v919_v8, %v873_v7  ;;  %v772_v8 = vadd.f32 %v736_v42, %v2237_v6 }
 0x22d   : > { %1164 = vst.msk [vmem:[#allocation3 + $0x8] sm:$0x7f] %vm1162_vm4, %v1149_v52 }
 0x22e   : > { %v1036_v57 = vadd.f32 %v2257_v16, %v957_v48  ;;  %v740_v26 = vpop.permute.xlu2 %739  ;;  %v875_v31 = vadd.f32 %v2247_v11, %v772_v8 }
 0x22f   : > { %v1080_v43 = vpop.permute.xlu1 %1079 }
 0x230   : > { %v1119_v46 = vadd.f32 %v1080_v43, %v1035_v23 }
 0x231   : > { %v1193_v61 = vld [vmem:[#allocation3] sm:$0xff] }
 0x232   : > { %v1136_v49 = vadd.f32 %v2399_v19, %v1119_v46  ;;  %v774_v46 = vadd.f32 %v740_v26, %v2267_v21 }
 0x234   : > { %v1150_v53 = vmax.f32 %v1136_v49, 0.0  ;;  %v1194_v58 = vld [vmem:[#allocation3 + $0x8] sm:$0xff] }
 0x235   : > { %v1205_v4 = vpack.c.bf16 %v1194_v58, %v1193_v61 }
 0x236   : > { %1165 = vst.msk [vmem:[#allocation3 + $0x10] sm:$0x7f] %vm1162_vm4, %v1150_v53  ;;  %v1082_v9 = vpop.permute.xlu0 %1081  ;;  %v877_v53 = vadd.f32 %v2278_v27, %v774_v46 }
 0x237   : > { %v1120_v18 = vadd.f32 %v1082_v9, %v1036_v57  ;;  %v734_v20 = vpop.permute.xlu1 %733  ;;  %1906 = vmatmul.msk.bf16.vlgmr.msra.gmra.mxu1 %vm359_vm0, %v1205_v4 }
 0x238   : > { %v771_v12 = vadd.f32 %v734_v20, %v2227_v1 }
 0x239   : > { %v1137_v0 = vadd.f32 %v2399_v19, %v1120_v18 }
 0x23a   : > { %v874_v16 = vadd.f32 %v2235_v5, %v771_v12  ;;  %v1088_v5 = vpop.permute.xlu2 %1087 }
 0x23b   : > { %v1151_v60 = vmax.f32 %v1137_v0, 0.0 }
 0x23d   : > { %1166 = vst.msk [vmem:[#allocation3 + $0x18] sm:$0x7f] %vm1162_vm4, %v1151_v60  ;;  %v1362_v56 = vld [vmem:[#allocation3 + $0x10] sm:$0xff] }
 0x23e   : > { %v921_v59 = vpop.permute.xlu0 %920  ;;  %v1373_v30 = vpack.c.bf16 %v1362_v56, %v1194_v58 }
 0x23f   : > { %v958_v54 = vadd.f32 %v921_v59, %v874_v16  ;;  %v923_v32 = vpop.permute.xlu1 %922 }
 0x240   : > { %1918 = vmatmul.msk.bf16.vlgmr.msrb.gmra.mxu2 %vm359_vm0, %v1373_v30  ;;  %v959_v1 = vadd.f32 %v923_v32, %v875_v31 }
 0x241   : > { %v1037_v36 = vadd.f32 %v2270_v22, %v958_v54 }
 0x242   : > { %v1038_v42 = vadd.f32 %v2285_v29, %v959_v1  ;;  %v744_v58 = vpop.permute.xlu2 %743 }
 0x243   : > { %v1121_v38 = vadd.f32 %v1084_v55, %v1037_v36 }
 0x244   : > { %v1196_v6 = vld [vmem:[#allocation3 + $0x18] sm:$0xff] }
 0x245   : > { %v1138_v41 = vadd.f32 %v2399_v19, %v1121_v38  ;;  %v1206_v2 = vpack.c.bf16 %v1196_v6, %v1362_v56  ;;  %v776_v56 = vadd.f32 %v744_v58, %v2295_v34 }
 0x246   : > { %v1086_v52 = vpop.permute.xlu0 %1085 }
 0x247   : > { %v1152_v7 = vmax.f32 %v1138_v41, 0.0  ;;  %v1122_v23 = vadd.f32 %v1086_v52, %v1038_v42  ;;  %v738_v43 = vpop.permute.xlu1 %737  ;;  %1907 = vmatmul.msk.bf16.gmra.mxu1 %vm359_vm0, %v1206_v2  ;;  %1930 = vmatmul.msk.bf16.vlgmr.msrb.gmra.mxu3 %vm359_vm0, %v1206_v2  ;;  %v879_v31 = vadd.f32 %v2305_v39, %v776_v56 }
 0x248   : > { %v773_v22 = vadd.f32 %v738_v43, %v2253_v15 }
 0x249   : > { %1167 = vst.msk [vmem:[#allocation3 + $0x20] sm:$0x7f] %vm1162_vm4, %v1152_v7  ;;  %v1139_v11 = vadd.f32 %v2399_v19, %v1122_v23 }
 0x24a   : > { %v876_v29 = vadd.f32 %v2259_v17, %v773_v22  ;;  %v1092_v16 = vpop.permute.xlu2 %1091 }
 0x24b   : > { %v1153_v48 = vmax.f32 %v1139_v11, 0.0 }
 0x24d   : > { %1168 = vst.msk [vmem:[#allocation3 + $0x28] sm:$0x7f] %vm1162_vm4, %v1153_v48 }
 0x24e   : > { %v925_v55 = vpop.permute.xlu0 %924 }
 0x24f   : > { %v960_v49 = vadd.f32 %v925_v55, %v876_v29  ;;  %v927_v61 = vpop.permute.xlu1 %926 }
 0x250   : > { %v1364_v57 = vld [vmem:[#allocation3 + $0x20] sm:$0xff]  ;;  %v961_v9 = vadd.f32 %v927_v61, %v877_v53 }
 0x251   : > { %v1039_v4 = vadd.f32 %v2297_v35, %v960_v49  ;;  %v1374_v18 = vpack.c.bf16 %v1364_v57, %v1196_v6 }
 0x252   : > { %v1040_v0 = vadd.f32 %v2307_v40, %v961_v9 }
 0x253   : > { %v1123_v20 = vadd.f32 %v1088_v5, %v1039_v4  ;;  %1919 = vmatmul.msk.bf16.gmra.mxu2 %vm359_vm0, %v1374_v18 }
 0x254   : > { %v1198_v15 = vld [vmem:[#allocation3 + $0x28] sm:$0xff] }
 0x255   : > { %v1140_v21 = vadd.f32 %v2399_v19, %v1123_v20  ;;  %v1207_v17 = vpack.c.bf16 %v1198_v15, %v1364_v57 }
 0x256   : > { %v1090_v12 = vpop.permute.xlu0 %1089 }
 0x257   : > { %v1154_v8 = vmax.f32 %v1140_v21, 0.0  ;;  %v1124_v60 = vadd.f32 %v1090_v12, %v1040_v0  ;;  %v742_v27 = vpop.permute.xlu1 %741  ;;  %1908 = vmatmul.msk.bf16.gmra.mxu1 %vm359_vm0, %v1207_v17  ;;  %1931 = vmatmul.msk.bf16.gmra.mxu3 %vm359_vm0, %v1207_v17 }
 0x258   : > { %v775_v26 = vadd.f32 %v742_v27, %v2283_v28  ;;  %v748_v28 = vpop.permute.xlu2 %747 }
 0x259   : > { %1169 = vst.msk [vmem:[#allocation3 + $0x30] sm:$0x7f] %vm1162_vm4, %v1154_v8  ;;  %v1141_v35 = vadd.f32 %v2399_v19, %v1124_v60  ;;  %v778_v43 = vadd.f32 %v748_v28, %v2326_v50 }
 0x25a   : > { %v878_v40 = vadd.f32 %v2293_v33, %v775_v26 }
 0x25b   : > { %v1155_v59 = vmax.f32 %v1141_v35, 0.0  ;;  %v881_v29 = vadd.f32 %v2334_v62, %v778_v43 }
 0x25d   : > { %1170 = vst.msk [vmem:[#allocation3 + $0x38] sm:$0x7f] %vm1162_vm4, %v1155_v59 }
 0x25e   : > { %v929_v30 = vpop.permute.xlu0 %928 }
 0x25f   : > { %v962_v54 = vadd.f32 %v929_v30, %v878_v40  ;;  %v931_v32 = vpop.permute.xlu1 %930 }
 0x260   : > { %v1366_v36 = vld [vmem:[#allocation3 + $0x30] sm:$0xff]  ;;  %v963_v38 = vadd.f32 %v931_v32, %v879_v31  ;;  %v1096_v22 = vpop.permute.xlu2 %1095 }
 0x261   : > { %v1041_v1 = vadd.f32 %v2317_v45, %v962_v54  ;;  %v1375_v6 = vpack.c.bf16 %v1366_v36, %v1198_v15 }
 0x262   : > { %v1042_v2 = vadd.f32 %v2329_v51, %v963_v38 }
 0x263   : > { %v1125_v41 = vadd.f32 %v1092_v16, %v1041_v1  ;;  %1920 = vmatmul.msk.bf16.gmra.mxu2 %vm359_vm0, %v1375_v6 }
 0x264   : > { %v1200_v34 = vld [vmem:[#allocation3 + $0x38] sm:$0xff] }
 0x265   : > { %v1142_v42 = vadd.f32 %v2399_v19, %v1125_v41  ;;  %v1208_v33 = vpack.c.bf16 %v1200_v34, %v1366_v36 }
 0x266   : > { %v1094_v5 = vpop.permute.xlu0 %1093 }
 0x267   : > { %v1156_v52 = vmax.f32 %v1142_v42, 0.0  ;;  %v1126_v7 = vadd.f32 %v1094_v5, %v1042_v2  ;;  %v746_v39 = vpop.permute.xlu1 %745  ;;  %1909 = vmatmul.msk.bf16.gmra.mxu1 %vm359_vm0, %v1208_v33  ;;  %1932 = vmatmul.msk.bf16.gmra.mxu3 %vm359_vm0, %v1208_v33 }
 0x268   : > { %v777_v23 = vadd.f32 %v746_v39, %v2312_v44  ;;  %v752_v62 = vpop.permute.xlu2 %751 }
 0x269   : > { %1171 = vst.msk [vmem:[#allocation3 + $0x40] sm:$0x7f] %vm1162_vm4, %v1156_v52  ;;  %v1143_v45 = vadd.f32 %v2399_v19, %v1126_v7  ;;  %v780_v0 = vadd.f32 %v752_v62, %v2351_v13 }
 0x26a   : > { %v880_v51 = vadd.f32 %v2320_v47, %v777_v23 }
 0x26b   : > { %v1157_v11 = vmax.f32 %v1143_v45, 0.0  ;;  %v883_v60 = vadd.f32 %v2361_v24, %v780_v0 }
 0x26d   : > { %1172 = vst.msk [vmem:[#allocation3 + $0x48] sm:$0x7f] %vm1162_vm4, %v1157_v11 }
 0x26e   : > { %v933_v46 = vpop.permute.xlu0 %932 }
 0x26f   : > { %v964_v48 = vadd.f32 %v933_v46, %v880_v51  ;;  %v935_v55 = vpop.permute.xlu1 %934 }
 0x270   : > { %v1368_v49 = vld [vmem:[#allocation3 + $0x40] sm:$0xff]  ;;  %v965_v61 = vadd.f32 %v935_v55, %v881_v29  ;;  %v1100_v59 = vpop.permute.xlu2 %1099 }
 0x271   : > { %v1043_v53 = vadd.f32 %v2341_v3, %v964_v48  ;;  %v1376_v58 = vpack.c.bf16 %v1368_v49, %v1200_v34 }
 0x272   : > { %v1044_v4 = vadd.f32 %v2353_v14, %v965_v61 }
 0x273   : > { %v1127_v57 = vadd.f32 %v1096_v22, %v1043_v53  ;;  %1921 = vmatmul.msk.bf16.gmra.mxu2 %vm359_vm0, %v1376_v58 }
 0x274   : > { %v1202_v44 = vld [vmem:[#allocation3 + $0x48] sm:$0xff] }
 0x275   : > { %v1144_v50 = vadd.f32 %v2399_v19, %v1127_v57  ;;  %v1209_v47 = vpack.c.bf16 %v1202_v44, %v1368_v49 }
 0x276   : > { %v1098_v9 = vpop.permute.xlu0 %1097 }
 0x277   : > { %v1158_v18 = vmax.f32 %v1144_v50, 0.0  ;;  %v1128_v20 = vadd.f32 %v1098_v9, %v1044_v4  ;;  %v750_v15 = vpop.permute.xlu1 %749  ;;  %1910 = vmatmul.msk.bf16.gmra.mxu1 %vm359_vm0, %v1209_v47  ;;  %1933 = vmatmul.msk.bf16.gmra.mxu3 %vm359_vm0, %v1209_v47 }
 0x278   : > { %v779_v21 = vadd.f32 %v750_v15, %v2338_v63 }
 0x279   : > { %1173 = vst.msk [vmem:[#allocation3 + $0x50] sm:$0x7f] %vm1162_vm4, %v1158_v18  ;;  %v1145_v3 = vadd.f32 %v2399_v19, %v1128_v20 }
 0x27a   : > { %v882_v14 = vadd.f32 %v2349_v10, %v779_v21 }
 0x27b   : > { %v1159_v17 = vmax.f32 %v1145_v3, 0.0 }
 0x27d   : > { %1174 = vst.msk [vmem:[#allocation3 + $0x58] sm:$0x7f] %vm1162_vm4, %v1159_v17 }
 0x27e   : > { %v937_v12 = vpop.permute.xlu0 %936 }
 0x27f   : > { %v966_v8 = vadd.f32 %v937_v12, %v882_v14  ;;  %v939_v27 = vpop.permute.xlu1 %938 }
 0x280   : > { %v1370_v35 = vld [vmem:[#allocation3 + $0x50] sm:$0xff]  ;;  %v967_v16 = vadd.f32 %v939_v27, %v883_v60 }
 0x281   : > { %v1045_v26 = vadd.f32 %v2363_v25, %v966_v8  ;;  %v1377_v56 = vpack.c.bf16 %v1370_v35, %v1202_v44 }
 0x282   : > { %v1046_v30 = vadd.f32 %v2378_v37, %v967_v16 }
 0x283   : > { %v1129_v40 = vadd.f32 %v1100_v59, %v1045_v26  ;;  %1922 = vmatmul.msk.bf16.gmra.mxu2 %vm359_vm0, %v1377_v56 }
 0x284   : > { %v1204_v63 = vld [vmem:[#allocation3 + $0x58] sm:$0xff] }
 0x285   : > { %v1146_v13 = vadd.f32 %v2399_v19, %v1129_v40  ;;  %v1210_v10 = vpack.c.bf16 %v1204_v63, %v1370_v35 }
 0x286   : > { %v1102_v54 = vpop.permute.xlu0 %1101 }
 0x287   : > { %v1160_v31 = vmax.f32 %v1146_v13, 0.0  ;;  %v1130_v32 = vadd.f32 %v1102_v54, %v1046_v30  ;;  %1911 = vmatmul.msk.bf16.gmra.mxu1 %vm359_vm0, %v1210_v10  ;;  %1934 = vmatmul.msk.bf16.gmra.mxu3 %vm359_vm0, %v1210_v10 }
 0x289   : > { %1175 = vst.msk [vmem:[#allocation3 + $0x60] sm:$0x7f] %vm1162_vm4, %v1160_v31  ;;  %v1147_v24 = vadd.f32 %v2399_v19, %v1130_v32 }
 0x28b   : > { %v1161_v25 = vmax.f32 %v1147_v24, 0.0 }
 0x28d   : > { %1176 = vst.msk [vmem:[#allocation3 + $0x68] sm:$0x7f] %vm1162_vm4, %v1161_v25 }
 0x290   : > { %v1372_v36 = vld [vmem:[#allocation3 + $0x60] sm:$0xff] }
 0x291   : > { %v1378_v1 = vpack.c.bf16 %v1372_v36, %v1204_v63 }
 0x293   : > { %1923 = vmatmul.msk.bf16.gmra.mxu2 %vm359_vm0, %v1378_v1 }
 0x294   : > { %v1541_v37 = vld [vmem:[#allocation3 + $0x68] sm:$0xff] }
 0x295   : > { %v1547_v38 = vpack.c.bf16 %v1541_v37, %v1372_v36 }
 0x297   : > { %1935 = vmatmul.msk.bf16.gmra.mxu3 %vm359_vm0, %v1547_v38 }
 0x2b4   : > { %v2485_v6 = vpop.f32.mrf.mxu1 }
 0x2b5   : > { %v1300_v41 = vrot.slane %v2485_v6, 1 }
 0x2b7   : > { %1312 = vrot.lane.b32.xlu1 %v1300_v41, %s2022_s14 }
 0x2bc   : > { %v2489_v28 = vpop.f32.mrf.mxu1 }
 0x2bd   : > { %v1301_v19 = vrot.slane %v2489_v28, 1 }
 0x2bf   : > { %1314 = vrot.lane.b32.xlu2 %v1301_v19, %s2022_s14 }
 0x2c3   : > { %v2493_v34 = vpop.f32.mrf.mxu2 }
 0x2c4   : > { %v1469_v42 = vrot.slane %v2493_v34, 1  ;;  %v2496_v2 = vpop.f32.mrf.mxu1 }
 0x2c5   : > { %v1302_v33 = vrot.slane %v2496_v2, 1 }
 0x2c6   : > { %1481 = vrot.lane.b32.xlu1 %v1469_v42, %s2022_s14 }
 0x2c7   : > { %1316 = vrot.lane.b32.xlu0 %v1302_v33, %s2022_s14 }
 0x2ca   : > { %v2501_v5 = vpop.f32.mrf.mxu3 }
 0x2cb   : > { %v2503_v52 = vpop.f32.mrf.mxu2  ;;  %v1638_v7 = vrot.slane %v2501_v5, 1 }
 0x2cc   : > { %v1470_v39 = vrot.slane %v2503_v52, 1  ;;  %v2507_v45 = vpop.f32.mrf.mxu1 }
 0x2cd   : > { %v1303_v11 = vrot.slane %v2507_v45, 1 }
 0x2ce   : > { %1650 = vrot.lane.b32.xlu1 %v1638_v7, %s2022_s14  ;;  %1483 = vrot.lane.b32.xlu2 %v1470_v39, %s2022_s14 }
 0x2d2   : > { %v2511_v23 = vpop.f32.mrf.mxu3 }
 0x2d3   : > { %v1639_v43 = vrot.slane %v2511_v23, 1 }
 0x2d4   : > { %v2515_v51 = vpop.f32.mrf.mxu1 }
 0x2d5   : > { %v1304_v29 = vrot.slane %v2515_v51, 1 }
 0x2d6   : > { %1652 = vrot.lane.b32.xlu2 %v1639_v43, %s2022_s14  ;;  %1318 = vrot.lane.b32.xlu1 %v1303_v11, %s2022_s14  ;;  %v2519_v22 = vpop.f32.mrf.mxu2 }
 0x2d7   : > { %v1471_v46 = vrot.slane %v2519_v22, 1 }
 0x2d9   : > { %1485 = vrot.lane.b32.xlu0 %v1471_v46, %s2022_s14 }
 0x2da   : > { %v2523_v48 = vpop.f32.mrf.mxu3 }
 0x2db   : > { %v1640_v53 = vrot.slane %v2523_v48, 1 }
 0x2dc   : > { %v2526_v55 = vpop.f32.mrf.mxu1 }
 0x2dd   : > { %v1305_v50 = vrot.slane %v2526_v55, 1 }
 0x2de   : > { %1320 = vrot.lane.b32.xlu2 %v1304_v29, %s2022_s14  ;;  %v2529_v49 = vpop.f32.mrf.mxu2 }
 0x2df   : > { %v1472_v61 = vrot.slane %v2529_v49, 1 }
 0x2e1   : > { %1487 = vrot.lane.b32.xlu1 %v1472_v61, %s2022_s14  ;;  %1654 = vrot.lane.b32.xlu0 %v1640_v53, %s2022_s14 }
 0x2e2   : > { %v2535_v58 = vpop.f32.mrf.mxu3 }
 0x2e3   : > { %v1641_v4 = vrot.slane %v2535_v58, 1 }
 0x2e4   : > { %v2537_v57 = vpop.f32.mrf.mxu1 }
 0x2e5   : > { %v1306_v15 = vrot.slane %v2537_v57, 1 }
 0x2e6   : > { %v2539_v44 = vpop.f32.mrf.mxu2 }
 0x2e7   : > { %v1473_v47 = vrot.slane %v2539_v44, 1 }
 0x2e9   : > { %1656 = vrot.lane.b32.xlu1 %v1641_v4, %s2022_s14  ;;  %1322 = vrot.lane.b32.xlu0 %v1305_v50, %s2022_s14  ;;  %v2634_v4 = vld [vmem:[%s2722_s7] ss:$0 sm:$0xff] }
 0x2ea   : > { %1489 = vrot.lane.b32.xlu2 %v1473_v47, %s2022_s14  ;;  %v2547_v9 = vpop.f32.mrf.mxu3 }
 0x2eb   : > { %v1642_v3 = vrot.slane %v2547_v9, 1 }
 0x2ec   : > { %v2549_v18 = vpop.f32.mrf.mxu1 }
 0x2ed   : > { %v1307_v8 = vrot.slane %v2549_v18, 1 }
 0x2ee   : > { %v2551_v20 = vpop.f32.mrf.mxu2 }
 0x2ef   : > { %v1474_v62 = vrot.slane %v2551_v20, 1 }
 0x2f1   : > { %1491 = vrot.lane.b32.xlu0 %v1474_v62, %s2022_s14  ;;  %1324 = vrot.lane.b32.xlu1 %v1306_v15, %s2022_s14 }
 0x2f2   : > { %1658 = vrot.lane.b32.xlu2 %v1642_v3, %s2022_s14  ;;  %v2559_v21 = vpop.f32.mrf.mxu3 }
 0x2f3   : > { %v1643_v14 = vrot.slane %v2559_v21, 1 }
 0x2f4   : > { %v2561_v0 = vpop.f32.mrf.mxu1 }
 0x2f5   : > { %v1308_v35 = vrot.slane %v2561_v0, 1 }
 0x2f6   : > { %v2563_v17 = vpop.f32.mrf.mxu2 }
 0x2f7   : > { %v1475_v12 = vrot.slane %v2563_v17, 1 }
 0x2f9   : > { %1660 = vrot.lane.b32.xlu0 %v1643_v14, %s2022_s14  ;;  %1493 = vrot.lane.b32.xlu1 %v1475_v12, %s2022_s14 }
 0x2fa   : > { %1326 = vrot.lane.b32.xlu2 %v1307_v8, %s2022_s14  ;;  %v2571_v60 = vpop.f32.mrf.mxu3 }
 0x2fb   : > { %v1644_v26 = vrot.slane %v2571_v60, 1 }
 0x2fc   : > { %v2578_v56 = vpop.f32.mrf.mxu1 }
 0x2fd   : > { %v1309_v63 = vrot.slane %v2578_v56, 1 }
 0x2fe   : > { %v2573_v27 = vpop.f32.mrf.mxu2 }
 0x2ff   : > { %v1476_v16 = vrot.slane %v2573_v27, 1 }
 0x301   : > { %1662 = vrot.lane.b32.xlu1 %v1644_v26, %s2022_s14  ;;  %1328 = vrot.lane.b32.xlu0 %v1308_v35, %s2022_s14 }
 0x302   : > { %1495 = vrot.lane.b32.xlu2 %v1476_v16, %s2022_s14  ;;  %v2583_v59 = vpop.f32.mrf.mxu3 }
 0x303   : > { %v1645_v30 = vrot.slane %v2583_v59, 1 }
 0x304   : > { %v2592_v10 = vpop.f32.mrf.mxu1 }
 0x305   : > { %v1310_v25 = vrot.slane %v2592_v10, 1 }
 0x306   : > { %v2585_v40 = vpop.f32.mrf.mxu2 }
 0x307   : > { %v1477_v13 = vrot.slane %v2585_v40, 1 }
 0x309   : > { %1330 = vrot.lane.b32.xlu1 %v1309_v63, %s2022_s14  ;;  %1497 = vrot.lane.b32.xlu0 %v1477_v13, %s2022_s14 }
 0x30a   : > { %1664 = vrot.lane.b32.xlu2 %v1645_v30, %s2022_s14  ;;  %v2595_v54 = vpop.f32.mrf.mxu3 }
 0x30b   : > { %v1646_v32 = vrot.slane %v2595_v54, 1 }
 0x30c   : > { %v2607_v1 = vpop.f32.mrf.mxu1 }
 0x30d   : > { %v1311_v38 = vrot.slane %v2607_v1, 1 }
 0x30e   : > { %v2597_v31 = vpop.f32.mrf.mxu2 }
 0x30f   : > { %v1478_v24 = vrot.slane %v2597_v31, 1 }
 0x311   : > { %1499 = vrot.lane.b32.xlu1 %v1478_v24, %s2022_s14  ;;  %1666 = vrot.lane.b32.xlu0 %v1646_v32, %s2022_s14 }
 0x312   : > { %1332 = vrot.lane.b32.xlu2 %v1310_v25, %s2022_s14  ;;  %v2605_v36 = vpop.f32.mrf.mxu3 }
 0x313   : > { %v1647_v41 = vrot.slane %v2605_v36, 1 }
 0x316   : > { %v2609_v37 = vpop.f32.mrf.mxu2 }
 0x317   : > { %v1479_v19 = vrot.slane %v2609_v37, 1 }
 0x319   : > { %1668 = vrot.lane.b32.xlu1 %v1647_v41, %s2022_s14  ;;  %1334 = vrot.lane.b32.xlu0 %v1311_v38, %s2022_s14  ;;  %v1315_v39 = vpop.permute.xlu2 %1314 }
 0x31a   : > { %1501 = vrot.lane.b32.xlu2 %v1479_v19, %s2022_s14  ;;  %v2617_v42 = vpop.f32.mrf.mxu3  ;;  %v1349_v46 = vadd.f32 %v1315_v39, %v2489_v28 }
 0x31b   : > { %v1648_v43 = vrot.slane %v2617_v42, 1 }
 0x31c   : > { %v1446_v61 = vadd.f32 %v2503_v52, %v1349_v46 }
 0x31e   : > { %v2619_v33 = vpop.f32.mrf.mxu2 }
 0x31f   : > { %v1480_v7 = vrot.slane %v2619_v33, 1 }
 0x321   : > { %1503 = vrot.lane.b32.xlu0 %v1480_v7, %s2022_s14 }
 0x322   : > { %1670 = vrot.lane.b32.xlu2 %v1648_v43, %s2022_s14  ;;  %v2625_v11 = vpop.f32.mrf.mxu3 }
 0x323   : > { %v1649_v29 = vrot.slane %v2625_v11, 1 }
 0x328   : > { %v1484_v53 = vpop.permute.xlu2 %1483 }
 0x329   : > { %1672 = vrot.lane.b32.xlu0 %v1649_v29, %s2022_s14  ;;  %v1518_v50 = vadd.f32 %v1484_v53, %v1446_v61  ;;  %v1313_v15 = vpop.permute.xlu1 %1312 }
 0x32a   : > { %v1348_v52 = vadd.f32 %v1313_v15, %v2485_v6 }
 0x32b   : > { %v1615_v47 = vadd.f32 %v2511_v23, %v1518_v50 }
 0x32c   : > { %v1445_v12 = vadd.f32 %v2493_v34, %v1348_v52 }
 0x330   : > { %v1653_v62 = vpop.permute.xlu2 %1652 }
 0x331   : > { %v1687_v3 = vadd.f32 %v1653_v62, %v1615_v47 }
 0x333   : > { %v1702_v28 = vadd.f32 %v2634_v4, %v1687_v3 }
 0x335   : > { %v1714_v14 = vmax.f32 %v1702_v28, 0.0 }
 0x337   : > { %1727 = vst.msk [vmem:[%s2642_s30 + $0x8] sm:$0x3f] %vm1725_vm5, %v1714_v14 }
 0x338   : > { %v1482_v23 = vpop.permute.xlu1 %1481  ;;  %v1321_v35 = vpop.permute.xlu2 %1320 }
 0x339   : > { %v1517_v8 = vadd.f32 %v1482_v23, %v1445_v12  ;;  %v1352_v63 = vadd.f32 %v1321_v35, %v2515_v51  ;;  %v1317_v30 = vpop.permute.xlu0 %1316 }
 0x33a   : > { %v1350_v34 = vadd.f32 %v1317_v30, %v2496_v2 }
 0x33b   : > { %v1614_v26 = vadd.f32 %v2501_v5, %v1517_v8  ;;  %v1449_v25 = vadd.f32 %v2539_v44, %v1352_v63 }
 0x33c   : > { %v1447_v51 = vadd.f32 %v2519_v22, %v1350_v34 }
 0x340   : > { %v1651_v16 = vpop.permute.xlu1 %1650 }
 0x341   : > { %v1686_v13 = vadd.f32 %v1651_v16, %v1614_v26 }
 0x343   : > { %v1701_v32 = vadd.f32 %v2634_v4, %v1686_v13 }
 0x344   : > { %v1490_v24 = vpop.permute.xlu2 %1489 }
 0x345   : > { %v1713_v6 = vmax.f32 %v1701_v32, 0.0  ;;  %v1521_v38 = vadd.f32 %v1490_v24, %v1449_v25 }
 0x347   : > { %1726 = vst.msk [vmem:[%s2642_s30] sm:$0x3f] %vm1725_vm5, %v1713_v6  ;;  %v1618_v5 = vadd.f32 %v2547_v9, %v1521_v38 }
 0x348   : > { %v1319_v41 = vpop.permute.xlu1 %1318 }
 0x349   : > { %v1351_v29 = vadd.f32 %v1319_v41, %v2507_v45 }
 0x34b   : > { %v1486_v19 = vpop.permute.xlu0 %1485  ;;  %v1448_v9 = vadd.f32 %v2529_v49, %v1351_v29 }
 0x34c   : > { %v1659_v7 = vpop.permute.xlu2 %1658  ;;  %v1519_v43 = vadd.f32 %v1486_v19, %v1447_v51 }
 0x34d   : > { %v1690_v39 = vadd.f32 %v1659_v7, %v1618_v5 }
 0x34e   : > { %v1616_v53 = vadd.f32 %v2523_v48, %v1519_v43 }
 0x34f   : > { %v1705_v46 = vadd.f32 %v2634_v4, %v1690_v39 }
 0x351   : > { %v1717_v44 = vmax.f32 %v1705_v46, 0.0 }
 0x353   : > { %1730 = vst.msk [vmem:[%s2642_s30 + $0x20] sm:$0x3f] %vm1725_vm5, %v1717_v44  ;;  %v1655_v2 = vpop.permute.xlu0 %1654  ;;  %v1488_v61 = vpop.permute.xlu1 %1487 }
 0x354   : > { %v1688_v50 = vadd.f32 %v1655_v2, %v1616_v53  ;;  %v1327_v47 = vpop.permute.xlu2 %1326  ;;  %v1520_v15 = vadd.f32 %v1488_v61, %v1448_v9 }
 0x355   : > { %v1355_v3 = vadd.f32 %v1327_v47, %v2549_v18 }
 0x356   : > { %v1703_v22 = vadd.f32 %v2634_v4, %v1688_v50  ;;  %v1617_v45 = vadd.f32 %v2535_v58, %v1520_v15 }
 0x357   : > { %v1452_v23 = vadd.f32 %v2573_v27, %v1355_v3 }
 0x358   : > { %v1715_v62 = vmax.f32 %v1703_v22, 0.0 }
 0x35a   : > { %1728 = vst.msk [vmem:[%s2642_s30 + $0x10] sm:$0x3f] %vm1725_vm5, %v1715_v62 }
 0x35b   : > { %v1323_v48 = vpop.permute.xlu0 %1322  ;;  %v1657_v28 = vpop.permute.xlu1 %1656 }
 0x35c   : > { %v1496_v52 = vpop.permute.xlu2 %1495  ;;  %v1689_v14 = vadd.f32 %v1657_v28, %v1617_v45  ;;  %v1353_v8 = vadd.f32 %v1323_v48, %v2526_v55 }
 0x35d   : > { %v1524_v49 = vadd.f32 %v1496_v52, %v1452_v23 }
 0x35e   : > { %v1704_v12 = vadd.f32 %v2634_v4, %v1689_v14  ;;  %v1450_v58 = vadd.f32 %v2551_v20, %v1353_v8 }
 0x35f   : > { %v1621_v26 = vadd.f32 %v2583_v59, %v1524_v49 }
 0x360   : > { %v1716_v35 = vmax.f32 %v1704_v12, 0.0 }
 0x362   : > { %1729 = vst.msk [vmem:[%s2642_s30 + $0x18] sm:$0x3f] %vm1725_vm5, %v1716_v35 }
 0x363   : > { %v1492_v18 = vpop.permute.xlu0 %1491  ;;  %v1325_v16 = vpop.permute.xlu1 %1324 }
 0x364   : > { %v1665_v63 = vpop.permute.xlu2 %1664  ;;  %v1522_v30 = vadd.f32 %v1492_v18, %v1450_v58  ;;  %v1354_v32 = vadd.f32 %v1325_v16, %v2537_v57 }
 0x365   : > { %v1693_v13 = vadd.f32 %v1665_v63, %v1621_v26 }
 0x366   : > { %v1619_v55 = vadd.f32 %v2559_v21, %v1522_v30  ;;  %v1451_v34 = vadd.f32 %v2563_v17, %v1354_v32 }
 0x367   : > { %v1708_v27 = vadd.f32 %v2634_v4, %v1693_v13 }
 0x369   : > { %v1720_v24 = vmax.f32 %v1708_v27, 0.0 }
 0x36b   : > { %1733 = vst.msk [vmem:[%s2642_s30 + $0x38] sm:$0x3f] %vm1725_vm5, %v1720_v24  ;;  %v1661_v6 = vpop.permute.xlu0 %1660  ;;  %v1494_v25 = vpop.permute.xlu1 %1493 }
 0x36c   : > { %v1691_v38 = vadd.f32 %v1661_v6, %v1619_v55  ;;  %v1333_v59 = vpop.permute.xlu2 %1332  ;;  %v1523_v41 = vadd.f32 %v1494_v25, %v1451_v34 }
 0x36d   : > { %v1358_v5 = vadd.f32 %v1333_v59, %v2592_v10 }
 0x36e   : > { %v1706_v20 = vadd.f32 %v2634_v4, %v1691_v38  ;;  %v1620_v57 = vadd.f32 %v2571_v60, %v1523_v41 }
 0x36f   : > { %v1455_v43 = vadd.f32 %v2609_v37, %v1358_v5 }
 0x370   : > { %v1718_v19 = vmax.f32 %v1706_v20, 0.0 }
 0x372   : > { %1731 = vst.msk [vmem:[%s2642_s30 + $0x28] sm:$0x3f] %vm1725_vm5, %v1718_v19 }
 0x373   : > { %v1329_v21 = vpop.permute.xlu0 %1328  ;;  %v1663_v51 = vpop.permute.xlu1 %1662 }
 0x374   : > { %v1502_v7 = vpop.permute.xlu2 %1501  ;;  %v1692_v39 = vadd.f32 %v1663_v51, %v1620_v57  ;;  %v1356_v29 = vadd.f32 %v1329_v21, %v2561_v0 }
 0x375   : > { %v1527_v17 = vadd.f32 %v1502_v7, %v1455_v43 }
 0x376   : > { %v1707_v46 = vadd.f32 %v2634_v4, %v1692_v39  ;;  %v1453_v60 = vadd.f32 %v2585_v40, %v1356_v29 }
 0x377   : > { %v1624_v53 = vadd.f32 %v2617_v42, %v1527_v17 }
 0x378   : > { %v1719_v44 = vmax.f32 %v1707_v46, 0.0 }
 0x37a   : > { %1732 = vst.msk [vmem:[%s2642_s30 + $0x30] sm:$0x3f] %vm1725_vm5, %v1719_v44 }
 0x37b   : > { %v1498_v10 = vpop.permute.xlu0 %1497  ;;  %v1331_v2 = vpop.permute.xlu1 %1330 }
 0x37c   : > { %v1671_v61 = vpop.permute.xlu2 %1670  ;;  %v1525_v47 = vadd.f32 %v1498_v10, %v1453_v60  ;;  %v1357_v9 = vadd.f32 %v1331_v2, %v2578_v56 }
 0x37d   : > { %v1696_v50 = vadd.f32 %v1671_v61, %v1624_v53 }
 0x37e   : > { %v1622_v0 = vadd.f32 %v2595_v54, %v1525_v47  ;;  %v1454_v3 = vadd.f32 %v2597_v31, %v1357_v9 }
 0x37f   : > { %v1711_v37 = vadd.f32 %v2634_v4, %v1696_v50 }
 0x381   : > { %v1723_v22 = vmax.f32 %v1711_v37, 0.0 }
 0x383   : > { %1736 = vst.msk [vmem:[%s2642_s30 + $0x50] sm:$0x3f] %vm1725_vm5, %v1723_v22  ;;  %v1667_v15 = vpop.permute.xlu0 %1666  ;;  %v1500_v62 = vpop.permute.xlu1 %1499 }
 0x384   : > { %v1694_v42 = vadd.f32 %v1667_v15, %v1622_v0  ;;  %v1526_v45 = vadd.f32 %v1500_v62, %v1454_v3 }
 0x386   : > { %v1709_v40 = vadd.f32 %v2634_v4, %v1694_v42  ;;  %v1623_v28 = vadd.f32 %v2605_v36, %v1526_v45 }
 0x388   : > { %v1721_v48 = vmax.f32 %v1709_v40, 0.0 }
 0x38a   : > { %1734 = vst.msk [vmem:[%s2642_s30 + $0x40] sm:$0x3f] %vm1725_vm5, %v1721_v48 }
 0x38b   : > { %v1335_v56 = vpop.permute.xlu0 %1334  ;;  %v1669_v52 = vpop.permute.xlu1 %1668 }
 0x38c   : > { %v1695_v54 = vadd.f32 %v1669_v52, %v1623_v28  ;;  %v1359_v23 = vadd.f32 %v1335_v56, %v2607_v1 }
 0x38e   : > { %v1710_v14 = vadd.f32 %v2634_v4, %v1695_v54  ;;  %v1456_v49 = vadd.f32 %v2619_v33, %v1359_v23 }
 0x390   : > { %v1722_v12 = vmax.f32 %v1710_v14, 0.0 }
 0x392   : > { %1735 = vst.msk [vmem:[%s2642_s30 + $0x48] sm:$0x3f] %vm1725_vm5, %v1722_v12 }
 0x393   : > { %v1504_v31 = vpop.permute.xlu0 %1503 }
 0x394   : > { %v1528_v8 = vadd.f32 %v1504_v31, %v1456_v49 }
 0x396   : > { %v1625_v35 = vadd.f32 %v2625_v11, %v1528_v8 }
 0x39b   : > { %v1673_v18 = vpop.permute.xlu0 %1672 }
 0x39c   : > { %v1697_v26 = vadd.f32 %v1673_v18, %v1625_v35 }
 0x39e   : > { %v1712_v36 = vadd.f32 %v2634_v4, %v1697_v26 }
 0x3a0   : > { %v1724_v16 = vmax.f32 %v1712_v36, 0.0 }
 0x3a2   : > { %1737 = vst.msk [vmem:[%s2642_s30 + $0x58] sm:$0x3f] %vm1725_vm5, %v1724_v16 }
 0x3a3 PF: > { %s18_s27 = sadd.s32 1, %s2019_s27  }
 0x3a4   : > { %p15_p4 = scmp.ge.s32.totalorder %s18_s27, 4  }
 0x3a6   :  { %17 = sbr.rel (!%p15_p4) target bundleno = 1 (0x1), region = 93 }

</bundles_post_ra>
